<compile_context>
chip_gen: v5e
topology: v5e:2x2
jax: 0.10.0
libtpu: 0.0.40
codegen_flags: <defaults>
</compile_context>

<pallas_src>
import functools

import jax
import jax.numpy as jnp
from jax import lax
from jax.experimental import pallas as pl
from jax.experimental.pallas import tpu as pltpu


def _round_up(x: int, m: int) -> int:
    return (x + m - 1) // m * m


def _cdiv(a: int, b: int) -> int:
    return (a + b - 1) // b


def _avg_readout_kernel(mask_ref, emb_ref, out_ref, *scratch,
                        acc_in_out: bool, use_ones_col: bool,
                        emb_resident: bool, tile_m: int, m_rem: int, d: int):
    k = pl.program_id(1)
    nk = pl.num_programs(1)

    idx = 0
    if acc_in_out:
        acc_ref = out_ref                # f32 output block doubles as the accumulator
    else:
        acc_ref = scratch[idx]
        idx += 1
    rsum_ref = None if use_ones_col else scratch[idx]

    @pl.when(k == 0)
    def _init():
        acc_ref[...] = jnp.zeros_like(acc_ref)
        if rsum_ref is not None:
            rsum_ref[...] = jnp.zeros_like(rsum_ref)

    if emb_resident:
        off = pl.multiple_of(k * tile_m, tile_m)
        emb_blk = emb_ref[pl.ds(off, tile_m), :]     # resident emb, slice per k step
    else:
        emb_blk = emb_ref[...]                       # streamed per-k block

    def accumulate(mask_tile):
        acc_ref[...] += jnp.dot(mask_tile, emb_blk,
                                preferred_element_type=jnp.float32)
        if rsum_ref is not None:
            rsum_ref[...] += jnp.sum(mask_tile.astype(jnp.float32),
                                     axis=1, keepdims=True)

    if m_rem == 0:
        accumulate(mask_ref[...])
    else:
        # mask is unpadded: the last k block over-hangs M.  Zero the garbage
        # lanes (only on that block) before feeding the MXU.
        @pl.when(k < nk - 1)
        def _body():
            accumulate(mask_ref[...])

        @pl.when(k == nk - 1)
        def _tail():
            col = lax.broadcasted_iota(jnp.int32, mask_ref.shape, 1)
            accumulate(jnp.where(col < m_rem, mask_ref[...], 0))

    @pl.when(k == nk - 1)
    def _finalize():
        vsum = acc_ref[...]                                   # [tile_n, d_pad], f32
        if use_ones_col:
            lane = lax.broadcasted_iota(jnp.int32, vsum.shape, 1)
            # row_sum came out of the MXU via the ones column at lane `d`.
            row_sum = jnp.sum(jnp.where(lane == d, vsum, 0.0),
                              axis=1, keepdims=True)
            vsum = jnp.where(lane < d, vsum, 0.0)             # keep padding out of the norm
        else:
            row_sum = rsum_ref[...]
        # Mean over neighbors.  Approximate reciprocal is fine: the per-row
        # scale cancels exactly under the following L2 normalization.
        global_emb = vsum * pl.reciprocal(row_sum, approx=True)
        # F.normalize(p=2, dim=1): x / max(||x||, eps), eps = 1e-12.
        sq = jnp.sum(global_emb * global_emb, axis=1, keepdims=True)
        inv_norm = lax.rsqrt(jnp.maximum(sq, 1e-24))          # eps^2 = 1e-24
        out_ref[...] = (global_emb * inv_norm).astype(out_ref.dtype)


def _choose_tiles(n, m, d_pad, mask_itemsize, out_itemsize, emb_itemsize):
    # Sublane alignment for N-tiled operands: 8 for 32-bit, 16 for 16-bit, 32 for 8-bit.
    align_n = 8 * max(1, 4 // min(mask_itemsize, out_itemsize))

    tile_n = min(512, _round_up(n, align_n))
    tile_m = min(2048, _round_up(m, 128))

    # v7x has 2 TensorCores: keep the "parallel" N axis at >= 2 blocks when N
    # is large enough to matter (negligible cost on single-TC v5e/v6e).
    if n >= 256 and _cdiv(n, tile_n) < 2:
        tile_n = max(align_n, _round_up(_cdiv(n, 2), align_n))

    budget = 40 * 1024 * 1024           # headroom inside the 48 MiB scoped limit

    def usage(tn, tm, resident):
        m_pad = _cdiv(m, tm) * tm
        emb_bytes = (2 * m_pad * d_pad * emb_itemsize if resident
                     else 2 * tm * d_pad * emb_itemsize)
        return (2 * tn * tm * mask_itemsize        # double-buffered mask tile
                + emb_bytes                         # emb (resident or streamed)
                + 2 * tn * d_pad * out_itemsize     # out block
                + tn * d_pad * 4 + tn * 128 * 4)    # worst-case scratch (acc + rsum)

    # Keep the whole (padded) emb resident in VMEM when it comfortably fits.
    emb_resident = usage(tile_n, tile_m, True) <= budget

    while usage(tile_n, tile_m, emb_resident) > budget and tile_m > 128:
        tile_m = max(128, _round_up(tile_m // 2, 128))
    while usage(tile_n, tile_m, emb_resident) > budget and tile_n > align_n:
        tile_n = max(align_n, _round_up(tile_n // 2, align_n))
    # TODO(synk): for very large D, add a "parallel" D grid axis (512-1024 lane
    # chunks) instead of shrinking tile_m, to respect v7x's 64 MiB VMEM.
    return tile_n, tile_m, emb_resident


def _reference(emb, mask):
    vsum = mask @ emb
    row_sum = jnp.sum(mask, axis=1, keepdims=True)
    global_emb = vsum / row_sum
    norm = jnp.sqrt(jnp.sum(global_emb * global_emb, axis=1, keepdims=True))
    return global_emb / jnp.maximum(norm, 1e-12)


def avg_readout(emb: jax.Array, mask: jax.Array, *, force_pallas: bool = False) -> jax.Array:
    """emb: [M, D], mask: [N, M] -> [N, D]  (== AvgReadout.forward(emb, mask))."""
    n, m = mask.shape
    m2, d = emb.shape
    assert m == m2, "mask and emb inner dims must match"

    out_dtype = jnp.result_type(mask.dtype, emb.dtype)

    # Tiny problems: a Pallas launch is pure overhead -- let XLA fuse it.
    if not force_pallas and (n * m) < (128 * 128):
        return _reference(emb, mask).astype(out_dtype)

    # Lane padding of emb; when D is not 128-aligned the spare column at index
    # d carries ones so the MXU produces row_sum for free.
    use_ones_col = (d % 128 != 0)
    d_pad = _round_up(d, 128)
    acc_in_out = (out_dtype == jnp.float32)       # accumulate straight into out_ref

    mask_itemsize = jnp.dtype(mask.dtype).itemsize
    emb_itemsize = jnp.dtype(emb.dtype).itemsize
    out_itemsize = jnp.dtype(out_dtype).itemsize

    tile_n, tile_m, emb_resident = _choose_tiles(
        n, m, d_pad, mask_itemsize, out_itemsize, emb_itemsize)

    grid_n = _cdiv(n, tile_n)
    grid_k = _cdiv(m, tile_m)
    m_pad = grid_k * tile_m
    m_rem = m % tile_m                            # 0 => no in-kernel tail masking

    # Only emb (the small operand) is padded; mask streams straight from HBM.
    emb_p = jnp.pad(emb, ((0, m_pad - m), (0, d_pad - d)))
    if use_ones_col:
        emb_p = emb_p.at[:m, d].set(1.0)          # ones column -> MXU row_sum

    if emb_resident:
        emb_spec = pl.BlockSpec((m_pad, d_pad), lambda i, k: (0, 0))   # DMA'd once
    else:
        emb_spec = pl.BlockSpec((tile_m, d_pad), lambda i, k: (k, 0))  # streamed

    scratch_shapes = []
    if not acc_in_out:
        scratch_shapes.append(pltpu.VMEM((tile_n, d_pad), jnp.float32))  # vsum acc
    if not use_ones_col:
        scratch_shapes.append(pltpu.VMEM((tile_n, 1), jnp.float32))      # row_sum acc

    emb_reads = 1 if emb_resident else grid_n
    cost = pl.CostEstimate(
        flops=2 * n * m_pad * d_pad,
        transcendentals=2 * n,
        bytes_accessed=(n * m * mask_itemsize
                        + emb_reads * m_pad * d_pad * emb_itemsize
                        + n * d_pad * out_itemsize),
    )

    kernel = functools.partial(
        _avg_readout_kernel,
        acc_in_out=acc_in_out, use_ones_col=use_ones_col,
        emb_resident=emb_resident, tile_m=tile_m, m_rem=m_rem, d=d)

    out = pl.pallas_call(
        kernel,
        out_shape=jax.ShapeDtypeStruct((n, d_pad), out_dtype),
        grid_spec=pltpu.PrefetchScalarGridSpec(
            num_scalar_prefetch=0,
            grid=(grid_n, grid_k),
            in_specs=[
                pl.BlockSpec((tile_n, tile_m), lambda i, k: (i, k)),   # mask tile
                emb_spec,                                              # emb
            ],
            out_specs=pl.BlockSpec((tile_n, d_pad), lambda i, k: (i, 0)),
            scratch_shapes=scratch_shapes,
        ),
        compiler_params=pltpu.CompilerParams(
            dimension_semantics=("parallel", "arbitrary"),
            vmem_limit_bytes=48 * 1024 * 1024,    # v7x-safe (64 MiB physical)
        ),
        cost_estimate=cost,
    )(mask, emb_p)

    return out if d_pad == d else out[:, :d]


if __name__ == "__main__":
    key = jax.random.PRNGKey(0)
    k1, k2 = jax.random.split(key)

    # --- Main case: ragged N/M/D, f32 --------------------------------------
    # Exercises: unpadded mask with N and M tails, resident emb, ones-column
    # row_sum, accumulate-into-out, 2-block parallel N axis.
    N, M, D = 300, 1000, 96
    emb = jax.random.normal(k1, (M, D), dtype=jnp.float32)
    mask = jax.random.uniform(k2, (N, M), dtype=jnp.float32, minval=0.1, maxval=1.0)
    out = avg_readout(emb, mask)
    jax.block_until_ready(out)
    ref = _reference(emb, mask)
    assert out.shape == (N, D) and out.dtype == jnp.float32
    assert jnp.allclose(out, ref, atol=1e-4, rtol=1e-4), "f32 mismatch vs reference"

    # --- 128-aligned D: row_sum scratch path --------------------------------
    N2, M2, D2 = 64, 400, 128
    emb2 = jax.random.normal(k1, (M2, D2), dtype=jnp.float32)
    mask2 = jax.random.uniform(k2, (N2, M2), dtype=jnp.float32, minval=0.1, maxval=1.0)
    out2 = avg_readout(emb2, mask2, force_pallas=True)
    jax.block_until_ready(out2)
    assert jnp.allclose(out2, _reference(emb2, mask2), atol=1e-4, rtol=1e-4)

    # --- bf16 inputs: f32 scratch accumulator, bf16 output ------------------
    N3, M3, D3 = 40, 130, 96
    emb3 = jax.random.normal(k1, (M3, D3), dtype=jnp.float32).astype(jnp.bfloat16)
    mask3 = jax.random.uniform(k2, (N3, M3), dtype=jnp.float32,
                               minval=0.1, maxval=1.0).astype(jnp.bfloat16)
    out3 = avg_readout(emb3, mask3, force_pallas=True)
    jax.block_until_ready(out3)
    assert out3.dtype == jnp.bfloat16
    ref3 = _reference(emb3.astype(jnp.float32), mask3.astype(jnp.float32))
    assert jnp.allclose(out3.astype(jnp.float32), ref3, atol=3e-2, rtol=3e-2)

    # --- Tiny problem: dispatcher skips Pallas ------------------------------
    emb_s = jax.random.normal(k1, (16, 32), dtype=jnp.float32)
    mask_s = jax.random.uniform(k2, (8, 16), dtype=jnp.float32, minval=0.1, maxval=1.0)
    out_s = avg_readout(emb_s, mask_s)
    jax.block_until_ready(out_s)
    assert jnp.allclose(out_s, _reference(emb_s, mask_s), atol=1e-5, rtol=1e-5)

    print("KERNEL_OK")
</pallas_src>

<mosaic_0001>
module attributes {stable_mosaic.version = 11 : i64} {
  func.func @_avg_readout_kernel(%arg0: i32, %arg1: i32, %arg2: memref<152x1024xf32, #tpu.memory_space<vmem>>, %arg3: memref<1024x128xf32, #tpu.memory_space<vmem>>, %arg4: memref<152x128xf32, #tpu.memory_space<vmem>>) attributes {dimension_semantics = [#tpu.dimension_semantics<parallel>, #tpu.dimension_semantics<arbitrary>], iteration_bounds = array<i64: 2, 1>, scalar_prefetch = 0 : i64, scratch_operands = 0 : i64, tpu.core_type = #tpu.core_type<tc>, window_params = [{transform_indices = @transform_0, window_bounds = array<i64: 152, 1024>}, {pipeline_mode = #tpu.pipeline_mode<synchronous>, transform_indices = @transform_1, window_bounds = array<i64: 1024, 128>}, {transform_indices = @transform_2, window_bounds = array<i64: 152, 128>}]} {
    %c0_i32 = arith.constant 0 : i32
    %0 = arith.cmpi eq, %arg1, %c0_i32 : i32
    %1 = arith.extui %0 : i1 to i32
    %c0_i32_0 = arith.constant 0 : i32
    %2 = arith.cmpi ne, %1, %c0_i32_0 : i32
    scf.if %2 {
      %cst = arith.constant 0.000000e+00 : f32
      %16 = vector.broadcast %cst : f32 to vector<152x128xf32>
      %c0_7 = arith.constant 0 : index
      %c0_8 = arith.constant 0 : index
      %17 = vector.load %arg4[%c0_7, %c0_8] : memref<152x128xf32, #tpu.memory_space<vmem>>, vector<152x128xf32>
      tpu.vector_store %arg4[%c0_7, %c0_8], %16 {strides = array<i32>} : memref<152x128xf32, #tpu.memory_space<vmem>>, vector<152x128xf32>,
    } else {
    }
    %c1024_i32 = arith.constant 1024 : i32
    %3 = arith.muli %arg1, %c1024_i32 : i32
    %4 = tpu.assume_multiple %3, 1024 : i32
    %5 = arith.index_cast %4 : i32 to index
    %c0 = arith.constant 0 : index
    %6 = vector.load %arg3[%5, %c0] : memref<1024x128xf32, #tpu.memory_space<vmem>>, vector<1024x128xf32>
    %c0_i32_1 = arith.constant 0 : i32
    %7 = arith.cmpi slt, %arg1, %c0_i32_1 : i32
    %8 = arith.extui %7 : i1 to i32
    %c0_i32_2 = arith.constant 0 : i32
    %9 = arith.cmpi ne, %8, %c0_i32_2 : i32
    scf.if %9 {
      %c0_7 = arith.constant 0 : index
      %c0_8 = arith.constant 0 : index
      %16 = vector.load %arg2[%c0_7, %c0_8] : memref<152x1024xf32, #tpu.memory_space<vmem>>, vector<152x1024xf32>
      %c0_9 = arith.constant 0 : index
      %c0_10 = arith.constant 0 : index
      %17 = vector.load %arg4[%c0_9, %c0_10] : memref<152x128xf32, #tpu.memory_space<vmem>>, vector<152x128xf32>
      %cst = arith.constant dense<0.000000e+00> : vector<152x128xf32>
      %18 = tpu.matmul %16, %6, %cst {dimension_numbers = #tpu.dot_dimension_numbers<[1], [0], [0], [1], [0, 0, 1, 1], [], []>} : vector<152x1024xf32>, vector<1024x128xf32>, vector<152x128xf32> -> vector<152x128xf32>
      %19 = arith.addf %17, %18 : vector<152x128xf32>
      %c0_11 = arith.constant 0 : index
      %c0_12 = arith.constant 0 : index
      %20 = vector.load %arg4[%c0_11, %c0_12] : memref<152x128xf32, #tpu.memory_space<vmem>>, vector<152x128xf32>
      tpu.vector_store %arg4[%c0_11, %c0_12], %19 {strides = array<i32>} : memref<152x128xf32, #tpu.memory_space<vmem>>, vector<152x128xf32>,
    } else {
    }
    %c0_i32_3 = arith.constant 0 : i32
    %10 = arith.cmpi eq, %arg1, %c0_i32_3 : i32
    %11 = arith.extui %10 : i1 to i32
    %c0_i32_4 = arith.constant 0 : i32
    %12 = arith.cmpi ne, %11, %c0_i32_4 : i32
    scf.if %12 {
      %16 = tpu.iota {dimensions = array<i32: 1>} : vector<152x1024xi32>
      %c1000_i32 = arith.constant 1000 : i32
      %17 = vector.broadcast %c1000_i32 : i32 to vector<152x1024xi32>
      %18 = arith.cmpi slt, %16, %17 : vector<152x1024xi32>
      %c0_7 = arith.constant 0 : index
      %c0_8 = arith.constant 0 : index
      %19 = vector.load %arg2[%c0_7, %c0_8] : memref<152x1024xf32, #tpu.memory_space<vmem>>, vector<152x1024xf32>
      %c0_i32_9 = arith.constant 0 : i32
      %20 = arith.sitofp %c0_i32_9 : i32 to f32
      %21 = vector.broadcast %20 : f32 to vector<152x1024xf32>
      %22 = arith.select %18, %19, %21 : vector<152x1024xi1>, vector<152x1024xf32>
      %c0_10 = arith.constant 0 : index
      %c0_11 = arith.constant 0 : index
      %23 = vector.load %arg4[%c0_10, %c0_11] : memref<152x128xf32, #tpu.memory_space<vmem>>, vector<152x128xf32>
      %cst = arith.constant dense<0.000000e+00> : vector<152x128xf32>
      %24 = tpu.matmul %22, %6, %cst {dimension_numbers = #tpu.dot_dimension_numbers<[1], [0], [0], [1], [0, 0, 1, 1], [], []>} : vector<152x1024xf32>, vector<1024x128xf32>, vector<152x128xf32> -> vector<152x128xf32>
      %25 = arith.addf %23, %24 : vector<152x128xf32>
      %c0_12 = arith.constant 0 : index
      %c0_13 = arith.constant 0 : index
      %26 = vector.load %arg4[%c0_12, %c0_13] : memref<152x128xf32, #tpu.memory_space<vmem>>, vector<152x128xf32>
      tpu.vector_store %arg4[%c0_12, %c0_13], %25 {strides = array<i32>} : memref<152x128xf32, #tpu.memory_space<vmem>>, vector<152x128xf32>,
    } else {
    }
    %c0_i32_5 = arith.constant 0 : i32
    %13 = arith.cmpi eq, %arg1, %c0_i32_5 : i32
    %14 = arith.extui %13 : i1 to i32
    %c0_i32_6 = arith.constant 0 : i32
    %15 = arith.cmpi ne, %14, %c0_i32_6 : i32
    scf.if %15 {
      %c0_7 = arith.constant 0 : index
      %c0_8 = arith.constant 0 : index
      %16 = vector.load %arg4[%c0_7, %c0_8] : memref<152x128xf32, #tpu.memory_space<vmem>>, vector<152x128xf32>
      %17 = tpu.iota {dimensions = array<i32: 1>} : vector<152x128xi32>
      %c96_i32 = arith.constant 96 : i32
      %18 = vector.broadcast %c96_i32 : i32 to vector<152x128xi32>
      %19 = arith.cmpi eq, %17, %18 : vector<152x128xi32>
      %cst = arith.constant 0.000000e+00 : f32
      %20 = vector.broadcast %cst : f32 to vector<152x128xf32>
      %21 = arith.select %19, %16, %20 : vector<152x128xi1>, vector<152x128xf32>
      %cst_9 = arith.constant dense<0.000000e+00> : vector<152xf32>
      %22 = vector.multi_reduction <add>, %21, %cst_9 [1] : vector<152x128xf32> to vector<152xf32>
      %23 = vector.shape_cast %22 : vector<152xf32> to vector<152x1xf32>
      %c96_i32_10 = arith.constant 96 : i32
      %24 = vector.broadcast %c96_i32_10 : i32 to vector<152x128xi32>
      %25 = arith.cmpi slt, %17, %24 : vector<152x128xi32>
      %cst_11 = arith.constant 0.000000e+00 : f32
      %26 = vector.broadcast %cst_11 : f32 to vector<152x128xf32>
      %27 = arith.select %25, %16, %26 : vector<152x128xi1>, vector<152x128xf32>
      %28 = tpu.reciprocal %23 {approx = true} : vector<152x1xf32> -> vector<152x1xf32>
      %29 = vector.broadcast %28 : vector<152x1xf32> to vector<152x128xf32>
      %30 = arith.mulf %27, %29 : vector<152x128xf32>
      %31 = arith.mulf %30, %30 : vector<152x128xf32>
      %cst_12 = arith.constant dense<0.000000e+00> : vector<152xf32>
      %32 = vector.multi_reduction <add>, %31, %cst_12 [1] : vector<152x128xf32> to vector<152xf32>
      %33 = vector.shape_cast %32 : vector<152xf32> to vector<152x1xf32>
      %cst_13 = arith.constant 1.000000e-24 : f32
      %34 = vector.broadcast %cst_13 : f32 to vector<152x1xf32>
      %35 = arith.maximumf %33, %34 : vector<152x1xf32>
      %36 = math.rsqrt %35 : vector<152x1xf32>
      %37 = vector.broadcast %36 : vector<152x1xf32> to vector<152x128xf32>
      %38 = arith.mulf %30, %37 : vector<152x128xf32>
      %c0_14 = arith.constant 0 : index
      %c0_15 = arith.constant 0 : index
      %39 = vector.load %arg4[%c0_14, %c0_15] : memref<152x128xf32, #tpu.memory_space<vmem>>, vector<152x128xf32>
      tpu.vector_store %arg4[%c0_14, %c0_15], %38 {strides = array<i32>} : memref<152x128xf32, #tpu.memory_space<vmem>>, vector<152x128xf32>,
    } else {
    }
    return
  }
  func.func @transform_0(%arg0: i32, %arg1: i32) -> (i32, i32) {
    %c0_i32 = arith.constant 0 : i32
    return %arg0, %arg1 : i32, i32
  }
  func.func @transform_1(%arg0: i32, %arg1: i32) -> (i32, i32) {
    %c0_i32 = arith.constant 0 : i32
    %c0_i32_0 = arith.constant 0 : i32
    %c0_i32_1 = arith.constant 0 : i32
    return %c0_i32, %c0_i32_0 : i32, i32
  }
  func.func @transform_2(%arg0: i32, %arg1: i32) -> (i32, i32) {
    %c0_i32 = arith.constant 0 : i32
    %c0_i32_0 = arith.constant 0 : i32
    return %arg0, %c0_i32 : i32, i32
  }
}

</mosaic_0001>

<bundles_post_ra>
// kernel: tpu_custom_call.1
= control target key start
LH: loop header
LB: loop body
LE: loop exit
PB: predicated region body
PF: predicated region fallthrough
CT: control target
= control target key end

     0   :  { %7 = vsyncpa [#allocation3], 0  ;;  %s3717_s0 = inlined_call_operand.hbm [shape: f32[300,1000], index: 0, kind: input, shape index: {}]   ;;  %s3718_s1 = inlined_call_operand.hbm [shape: f32[1024,128], index: 1, kind: input, shape index: {}]   ;;  %s3719_s2 = inlined_call_operand.hbm [shape: f32[300,128], index: 2, kind: output, shape index: {}]  }
   0x1   :  { %9 = vsyncpa [#allocation3 + $0x1], 0 }
   0x2   :  { %10 = vsyncpa [#allocation6], 0 }
   0x3   :  { %11 = vsyncpa [#allocation4], 0 }
   0x4   :  { %13 = vsyncpa [#allocation4 + $0x1], 0  ;;  %s3047_s9 = smov 0   ;;  %s3049_s10 = smov 0  }
   0x5   :  { %s3051_s11 = smov 0   ;;  %s3053_s12 = smov 0  }
   0x6   :  { %s3055_s13 = smov 0   ;;  %s3057_s14 = smov 0  }
   0x7 LB: > { %s2683_s15 = sadd.s32 4294967295, %s3023_s14   ;;  %s2684_s16 = sadd.s32 4294967294, %s3023_s14   ;;  %s3023_s14 = sphi %s3057_s14, %s19_s14   ;;  %s3019_s13 = sphi %s3055_s13, %s3730_s13   ;;  %s3015_s12 = sphi %s3053_s12, %s3729_s12   ;;  %s3011_s11 = sphi %s3051_s11, %s3728_s11   ;;  %s3007_s10 = sphi %s3049_s10, %s3727_s10   ;;  %s3003_s9 = sphi %s3047_s9, %s3726_s9  }
   0x8   : > { %p53_p0 = scmp.ne.s32.totalorder %s3007_s10, %s3003_s9  ;;  %p3081_p1 = scmp.eq.s32.totalorder %s2683_s15, 0 }
   0x9   : > { %p3085_p2 = scmp.eq.s32.totalorder %s2683_s15, 1  ;;  %p104_p3 = scmp.eq.s32.totalorder %s2684_s16, 1 }
   0xa   : > { %p3091_p4 = por %p3081_p1, %p53_p0  ;;  %p2685_p5 = scmp.ge.s32.totalorder %s3023_s14, 1 }
   0xb   : > { %p3096_p6 = por %p104_p3, %p53_p0  ;;  %p111_p7 = scmp.lt.s32.totalorder %s3023_s14, 3 }
   0xc   : > { %s122_s23 = sshll.u32 %s3718_s1, 4  ;;  %s3025_s25 = smov [#allocation5]   ;;  %s123_s23 = int_to_ptr.hbm [resolvable:$true] %s122_s23 }
   0xd   : > { %p3104_p8 = pnand %p2685_p5, %p111_p7  ;;  %s124_s26 = sshll.u32 %s3025_s25, 4  ;;  %s125_s26 = int_to_ptr.vmem [resolvable:$true] %s124_s26 }
   0xe   : > { %p2687_p11 = scmp.ge.s32.totalorder %s3023_s14, 2  ;;  %s3026_s27 = smov 128  }
   0xf   : > { %p2729_p9 = pneg %p3104_p8  ;;  %s3027_s28 = smov 8  }
  0x10   : > { %s31_s29 = sadd.s32 1, %s3019_s13  ;;  %s40_s30 = sadd.s32 1, %s3011_s11 }
  0x11   : > { %p2730_p10 = pnand %p2729_p9, %p3081_p1  ;;  %p33_p12 = scmp.ge.s32.totalorder %s31_s29, 2 }
  0x12   : > { %p47_p13 = scmp.ne.s32.totalorder %s3011_s11, %s3007_s10  ;;  %p48_p0 = scmp.eq.s32.totalorder %s3023_s14, 0 }
  0x13   : > { %2732 = dma.hbm_to_vmem [thread:$0]  (!%p2730_p10), %s123_s23, 16384, %s125_s26, [#allocation6], %s3026_s27, %s3026_s27, %s3027_s28  }
  0x14   : > { %s3732_s29 = smov (%p33_p12, %s31_s29), 0  ;;  %p49_p3 = por %p48_p0, %p47_p13 }
  0x15   : > { %p3122_p5 = por %p3085_p2, %p47_p13  ;;  %s35_s4 = ssub.s32 %s3019_s13, %s3732_s29 }
  0x16   : > { %p2742_p7 = scmp.lt.s32.totalorder %s3023_s14, 2  ;;  %p38_p9 = scmp.eq.s32.totalorder %s35_s4, 0 }
  0x17   : > { %s138_s5 = sand.u32 1, %s3011_s11   ;;  %s2717_s8 = smul.u32 1216, %s3019_s13 }
  0x18   : > { %s2718_s6 = smul.u32 1216, %s138_s5  ;;  %p2734_p10 = pnand %p2742_p7, %p49_p3 }
  0x19   : > { %s3131_s7 = scalar_select %p38_p9, %s3011_s11, %s40_s30  }
  0x1a   : > { %s142_s15 = scalar_lea.vmem [#allocation2], %s2718_s6  ;;  %s150_s23 = scalar_lea.hbm %s3717_s0, %s2717_s8 }
  0x1b   : > { %s153_s16 = sshll.u32 %s142_s15, 4  ;;  %s151_s18 = sshll.u32 %s150_s23, 4  ;;  %s154_s16 = int_to_ptr.vmem [resolvable:$true] %s153_s16  ;;  %s152_s18 = int_to_ptr.hbm [resolvable:$true] %s151_s18 }
  0x1c   : > { %s139_s25 = scalar_lea.sflag [#allocation3], %s138_s5  ;;  %s3028_s26 = smov 1024  }
  0x1d   : > { %s3029_s27 = smov 64   ;;  %165 = sbr.rel (%p3104_p8) target bundleno = 774 (0x306), region = 28 }
  0x1e   : > { %2736 = dma.hbm_to_vmem [thread:$0]  (!%p2734_p10), %s152_s18, 19456, %s154_s16, %s139_s25, %s3028_s26, %s3028_s26, %s3029_s27  }
  0x1f   : > { %s3140_s28 = sand.u32 (!%p3104_p8), 1, %s3007_s10  }
  0x20   : > { %s2719_s30 = smul.u32 (!%p3104_p8), 1216, %s3140_s28  ;;  %s168_s4 = scalar_lea.sflag (!%p3104_p8), [#allocation3], %s3140_s28 }
  0x22   : > { %s3144_s6 = scalar_lea.vmem [#allocation2], %s2719_s30 }
  0x23   : > { %2990 = dma.done.wait (%p3091_p4), %s168_s4, 19456  }
  0x24   : > { %2992 = vsyncadd (%p3091_p4), %s168_s4, 4294947840 }
  0x25   : > { %2994 = dma.done.wait (%p3081_p1), [#allocation6], 16384  }
  0x26   : > { %2996 = vsyncadd (%p3081_p1), [#allocation6], 4294950912  ;;  %v241_v0 = vld [vmem:[#allocation5 + $0x78] sm:$0xff]  ;;  %v240_v2 = vld [vmem:[#allocation5 + $0x70] sm:$0xff]  ;;  %s2720_s17 = smul.u32 152, %s3140_s28  ;;  %s2957_s26 = scalar_lea.hbm %s3719_s2, 304 }
  0x27   : > { %v273_v1 = vld [vmem:[#allocation5 + $0x178] sm:$0xff]  ;;  %1502 = vmatpush.msra.mxu0 %v241_v0  ;;  %v272_v4 = vld [vmem:[#allocation5 + $0x170] sm:$0xff]  ;;  %v239_v6 = vld [vmem:[#allocation5 + $0x68] sm:$0xff]  ;;  %s2716_s24 = smul.u32 152, %s3015_s12  ;;  %s2572_s12 = scalar_lea.sflag [#allocation4], %s3140_s28 }
  0x28   : > { %1650 = vmatpush.msra.mxu2 %v273_v1  ;;  %v257_v3 = vld [vmem:[#allocation5 + $0xf8] sm:$0xff]  ;;  %v256_v7 = vld [vmem:[#allocation5 + $0xf0] sm:$0xff]  ;;  %v271_v8 = vld [vmem:[#allocation5 + $0x168] sm:$0xff]  ;;  %s3639_s19 = scalar_lea.vmem [#allocation7], %s2720_s17 }
  0x29   : > { %v289_v5 = vld [vmem:[#allocation5 + $0x1f8] sm:$0xff]  ;;  %1576 = vmatpush.msra.mxu1 %v257_v3  ;;  %1503 = vmatpush.msra.mxu0 %v240_v2  ;;  %v288_v9 = vld [vmem:[#allocation5 + $0x1f0] sm:$0xff]  ;;  %v255_v10 = vld [vmem:[#allocation5 + $0xe8] sm:$0xff]  ;;  %s2583_s15 = scalar_lea.hbm %s3719_s2, %s2716_s24  ;;  %s2584_s16 = sshll.u32 %s3639_s19, 4  ;;  %s2585_s16 = int_to_ptr.vmem [resolvable:$true] %s2584_s16 }
  0x2a   : > { %1724 = vmatpush.msra.mxu3 %v289_v5  ;;  %1651 = vmatpush.msra.mxu2 %v272_v4  ;;  %v238_v11 = vld [vmem:[#allocation5 + $0x60] sm:$0xff]  ;;  %v287_v13 = vld [vmem:[#allocation5 + $0x1e8] sm:$0xff]  ;;  %v237_v16 = vld [vmem:[#allocation5 + $0x58] sm:$0xff]  ;;  %s2586_s21 = sshll.u32 %s2583_s15, 4  ;;  %s2587_s21 = int_to_ptr.hbm [resolvable:$true] %s2586_s21 }
  0x2b   : > { %1577 = vmatpush.msra.mxu1 %v256_v7  ;;  %v270_v12 = vld [vmem:[#allocation5 + $0x160] sm:$0xff]  ;;  %1504 = vmatpush.msra.mxu0 %v239_v6  ;;  %v269_v17 = vld [vmem:[#allocation5 + $0x158] sm:$0xff]  ;;  %v236_v20 = vld [vmem:[#allocation5 + $0x50] sm:$0xff]  ;;  %s2951_s22 = sshra.s32 %s2587_s21, 4  ;;  %s2952_s22 = int_to_ptr.hbm [resolvable:$true] %s2951_s22 }
  0x2c   : > { %1725 = vmatpush.msra.mxu3 %v288_v9  ;;  %1652 = vmatpush.msra.mxu2 %v271_v8  ;;  %v254_v14 = vld [vmem:[#allocation5 + $0xe0] sm:$0xff]  ;;  %v253_v18 = vld [vmem:[#allocation5 + $0xd8] sm:$0xff]  ;;  %v268_v21 = vld [vmem:[#allocation5 + $0x150] sm:$0xff]  ;;  %s2953_s23 = scalar_lea.hbm %s2952_s22, 152  ;;  %p2958_p8 = scmp.lt.s32.totalorder %s2952_s22, %s3719_s2 }
  0x2d   : > { %v286_v15 = vld [vmem:[#allocation5 + $0x1e0] sm:$0xff]  ;;  %1578 = vmatpush.msra.mxu1 %v255_v10  ;;  %1505 = vmatpush.msra.mxu0 %v238_v11  ;;  %v285_v19 = vld [vmem:[#allocation5 + $0x1d8] sm:$0xff]  ;;  %v252_v22 = vld [vmem:[#allocation5 + $0xd0] sm:$0xff]  ;;  %p2954_p1 = scmp.ne.s32.totalorder %s2952_s22, %s2953_s23  ;;  %p2959_p12 = scmp.lt.s32.totalorder %s2957_s26, %s2953_s23 }
  0x2e   : > { %1726 = vmatpush.msra.mxu3 %v287_v13  ;;  %1653 = vmatpush.msra.mxu2 %v270_v12  ;;  %v284_v23 = vld [vmem:[#allocation5 + $0x1d0] sm:$0xff]  ;;  %v235_v24 = vld [vmem:[#allocation5 + $0x48] sm:$0xff]  ;;  %v234_v28 = vld [vmem:[#allocation5 + $0x40] sm:$0xff] }
  0x2f   : > { %1579 = vmatpush.msra.mxu1 %v254_v14  ;;  %1506 = vmatpush.msra.mxu0 %v237_v16  ;;  %v267_v25 = vld [vmem:[#allocation5 + $0x148] sm:$0xff]  ;;  %v266_v29 = vld [vmem:[#allocation5 + $0x140] sm:$0xff]  ;;  %v233_v32 = vld [vmem:[#allocation5 + $0x38] sm:$0xff]  ;;  %p2955_p2 = pnand %p2954_p1, %p3122_p5  ;;  %p2960_p13 = por %p2959_p12, %p2958_p8 }
  0x30   : > { %1727 = vmatpush.msra.mxu3 %v286_v15  ;;  %1654 = vmatpush.msra.mxu2 %v269_v17  ;;  %v251_v26 = vld [vmem:[#allocation5 + $0xc8] sm:$0xff]  ;;  %v250_v30 = vld [vmem:[#allocation5 + $0xc0] sm:$0xff]  ;;  %v265_v33 = vld [vmem:[#allocation5 + $0x138] sm:$0xff] }
  0x31   : > { %1580 = vmatpush.msra.mxu1 %v253_v18  ;;  %1507 = vmatpush.msra.mxu0 %v236_v20  ;;  %v283_v27 = vld [vmem:[#allocation5 + $0x1c8] sm:$0xff]  ;;  %v282_v31 = vld [vmem:[#allocation5 + $0x1c0] sm:$0xff]  ;;  %v249_v34 = vld [vmem:[#allocation5 + $0xb8] sm:$0xff]  ;;  %p2956_p4 = pneg %p2955_p2 }
  0x32   : > { %1728 = vmatpush.msra.mxu3 %v285_v19  ;;  %1655 = vmatpush.msra.mxu2 %v268_v21  ;;  %v281_v35 = vld [vmem:[#allocation5 + $0x1b8] sm:$0xff]  ;;  %v232_v36 = vld [vmem:[#allocation5 + $0x30] sm:$0xff]  ;;  %v231_v40 = vld [vmem:[#allocation5 + $0x28] sm:$0xff] }
  0x33   : > { %1581 = vmatpush.msra.mxu1 %v252_v22  ;;  %1508 = vmatpush.msra.mxu0 %v235_v24  ;;  %v264_v37 = vld [vmem:[#allocation5 + $0x130] sm:$0xff]  ;;  %v263_v41 = vld [vmem:[#allocation5 + $0x128] sm:$0xff]  ;;  %v230_v44 = vld [vmem:[#allocation5 + $0x20] sm:$0xff]  ;;  %p2961_p0 = pnand %p2960_p13, %p2956_p4 }
  0x34   : > { %1729 = vmatpush.msra.mxu3 %v284_v23  ;;  %1656 = vmatpush.msra.mxu2 %v267_v25  ;;  %v248_v38 = vld [vmem:[#allocation5 + $0xb0] sm:$0xff]  ;;  %v247_v42 = vld [vmem:[#allocation5 + $0xa8] sm:$0xff]  ;;  %v262_v45 = vld [vmem:[#allocation5 + $0x120] sm:$0xff] }
  0x35   : > { %1582 = vmatpush.msra.mxu1 %v251_v26  ;;  %1509 = vmatpush.msra.mxu0 %v234_v28  ;;  %v280_v39 = vld [vmem:[#allocation5 + $0x1b0] sm:$0xff]  ;;  %v279_v43 = vld [vmem:[#allocation5 + $0x1a8] sm:$0xff]  ;;  %v246_v46 = vld [vmem:[#allocation5 + $0xa0] sm:$0xff] }
  0x36   : > { %1730 = vmatpush.msra.mxu3 %v283_v27  ;;  %1657 = vmatpush.msra.mxu2 %v266_v29  ;;  %v278_v47 = vld [vmem:[#allocation5 + $0x1a0] sm:$0xff]  ;;  %v229_v48 = vld [vmem:[#allocation5 + $0x18] sm:$0xff]  ;;  %v228_v52 = vld [vmem:[#allocation5 + $0x10] sm:$0xff] }
  0x37   : > { %1583 = vmatpush.msra.mxu1 %v250_v30  ;;  %1510 = vmatpush.msra.mxu0 %v233_v32  ;;  %v261_v49 = vld [vmem:[#allocation5 + $0x118] sm:$0xff]  ;;  %v260_v53 = vld [vmem:[#allocation5 + $0x110] sm:$0xff]  ;;  %v227_v56 = vld [vmem:[#allocation5 + $0x8] sm:$0xff] }
  0x38   : > { %1731 = vmatpush.msra.mxu3 %v282_v31  ;;  %1658 = vmatpush.msra.mxu2 %v265_v33  ;;  %v245_v50 = vld [vmem:[#allocation5 + $0x98] sm:$0xff]  ;;  %v244_v54 = vld [vmem:[#allocation5 + $0x90] sm:$0xff]  ;;  %v259_v57 = vld [vmem:[#allocation5 + $0x108] sm:$0xff] }
  0x39   : > { %1584 = vmatpush.msra.mxu1 %v249_v34  ;;  %1511 = vmatpush.msra.mxu0 %v232_v36  ;;  %v277_v51 = vld [vmem:[#allocation5 + $0x198] sm:$0xff]  ;;  %v276_v55 = vld [vmem:[#allocation5 + $0x190] sm:$0xff]  ;;  %v243_v58 = vld [vmem:[#allocation5 + $0x88] sm:$0xff] }
  0x3a   : > { %1732 = vmatpush.msra.mxu3 %v281_v35  ;;  %1659 = vmatpush.msra.mxu2 %v264_v37  ;;  %v275_v59 = vld [vmem:[#allocation5 + $0x188] sm:$0xff]  ;;  %v226_v60 = vld [vmem:[#allocation5] sm:$0xff]  ;;  %v1181_v63 = vld [vmem:[%s3144_s6 + $0x10] sm:$0xff] }
  0x3b   : > { %1585 = vmatpush.msra.mxu1 %v248_v38  ;;  %1512 = vmatpush.msra.mxu0 %v231_v40  ;;  %v258_v61 = vld [vmem:[#allocation5 + $0x100] sm:$0xff]  ;;  %v337_v0 = vld [vmem:[#allocation5 + $0x378] sm:$0xff]  ;;  %v1180_v3 = vld [vmem:[%s3144_s6 + $0x8] sm:$0xff] }
  0x3c   : > { %1733 = vmatpush.msra.mxu3 %v280_v39  ;;  %1660 = vmatpush.msra.mxu2 %v263_v41  ;;  %v1179_v62 = vld [vmem:[%s3144_s6] sm:$0xff]  ;;  %v1182_v4 = vld [vmem:[%s3144_s6 + $0x18] sm:$0xff]  ;;  %v336_v8 = vld [vmem:[#allocation5 + $0x370] sm:$0xff] }
  0x3d   : > { %1586 = vmatpush.msra.mxu1 %v247_v42  ;;  %1513 = vmatpush.msra.mxu0 %v230_v44  ;;  %v242_v1 = vld [vmem:[#allocation5 + $0x80] sm:$0xff]  ;;  %v305_v5 = vld [vmem:[#allocation5 + $0x278] sm:$0xff]  ;;  %v304_v9 = vld [vmem:[#allocation5 + $0x270] sm:$0xff] }
  0x3e   : > { %1734 = vmatpush.msra.mxu3 %v279_v43  ;;  %1661 = vmatpush.msra.mxu2 %v262_v45  ;;  %v274_v2 = vld [vmem:[#allocation5 + $0x180] sm:$0xff]  ;;  %v353_v6 = vld [vmem:[#allocation5 + $0x3f8] sm:$0xff]  ;;  %v352_v10 = vld [vmem:[#allocation5 + $0x3f0] sm:$0xff] }
  0x3f   : > { %1587 = vmatpush.msra.mxu1 %v246_v46  ;;  %1514 = vmatpush.msra.mxu0 %v229_v48  ;;  %v321_v7 = vld [vmem:[#allocation5 + $0x2f8] sm:$0xff]  ;;  %v320_v11 = vld [vmem:[#allocation5 + $0x2f0] sm:$0xff]  ;;  %v335_v12 = vld [vmem:[#allocation5 + $0x368] sm:$0xff] }
  0x40   : > { %1735 = vmatpush.msra.mxu3 %v278_v47  ;;  %1662 = vmatpush.msra.mxu2 %v261_v49  ;;  %v303_v13 = vld [vmem:[#allocation5 + $0x268] sm:$0xff]  ;;  %v1187_v14 = vld [vmem:[%s3144_s6 + $0x40] sm:$0xff]  ;;  %v1189_v15 = vld [vmem:[%s3144_s6 + $0x50] sm:$0xff] }
  0x41   : > { %1588 = vmatpush.msra.mxu1 %v245_v50  ;;  %1515 = vmatpush.msra.mxu0 %v228_v52  ;;  %v351_v16 = vld [vmem:[#allocation5 + $0x3e8] sm:$0xff]  ;;  %v334_v19 = vld [vmem:[#allocation5 + $0x360] sm:$0xff]  ;;  %v1190_v20 = vld [vmem:[%s3144_s6 + $0x58] sm:$0xff] }
  0x42   : > { %1736 = vmatpush.msra.mxu3 %v277_v51  ;;  %1663 = vmatpush.msra.mxu2 %v260_v53  ;;  %v319_v17 = vld [vmem:[#allocation5 + $0x2e8] sm:$0xff]  ;;  %v302_v21 = vld [vmem:[#allocation5 + $0x260] sm:$0xff]  ;;  %v333_v24 = vld [vmem:[#allocation5 + $0x358] sm:$0xff] }
  0x43   : > { %1589 = vmatpush.msra.mxu1 %v244_v54  ;;  %1516 = vmatpush.msra.mxu0 %v227_v56  ;;  %v1188_v18 = vld [vmem:[%s3144_s6 + $0x48] sm:$0xff]  ;;  %v350_v22 = vld [vmem:[#allocation5 + $0x3e0] sm:$0xff]  ;;  %v301_v25 = vld [vmem:[#allocation5 + $0x258] sm:$0xff] }
  0x44   : > { %1737 = vmatpush.msra.mxu3 %v276_v55  ;;  %1664 = vmatpush.msra.mxu2 %v259_v57  ;;  %v318_v23 = vld [vmem:[#allocation5 + $0x2e0] sm:$0xff]  ;;  %v349_v26 = vld [vmem:[#allocation5 + $0x3d8] sm:$0xff]  ;;  %v1197_v29 = vld [vmem:[%s3144_s6 + $0x90] sm:$0xff] }
  0x45   : > { %1590 = vmatpush.msra.mxu1 %v243_v58  ;;  %1517 = vmatpush.msra.mxu0 %v226_v60  ;;  %v317_v27 = vld [vmem:[#allocation5 + $0x2d8] sm:$0xff]  ;;  %v1195_v28 = vld [vmem:[%s3144_s6 + $0x80] sm:$0xff]  ;;  %v1196_v30 = vld [vmem:[%s3144_s6 + $0x88] sm:$0xff] }
  0x46   : > { %1738 = vmatpush.msra.mxu3 %v275_v59  ;;  %1665 = vmatpush.msra.mxu2 %v258_v61  ;;  %v1198_v31 = vld [vmem:[%s3144_s6 + $0x98] sm:$0xff]  ;;  %v332_v32 = vld [vmem:[#allocation5 + $0x350] sm:$0xff]  ;;  %v1203_v36 = vld [vmem:[%s3144_s6 + $0xc0] sm:$0xff] }
  0x47   : > { %1518 = vmatmul.f32.vlgmr.msra.gmra.mxu0 %v1179_v62  ;;  %1666 = vmatmul.f32.vlgmr.msra.gmra.mxu2 %v1181_v63  ;;  %v300_v33 = vld [vmem:[#allocation5 + $0x250] sm:$0xff]  ;;  %v1204_v38 = vld [vmem:[%s3144_s6 + $0xc8] sm:$0xff]  ;;  %v1206_v39 = vld [vmem:[%s3144_s6 + $0xd8] sm:$0xff] }
  0x48   : > { %1946 = vmatpush.msrb.mxu2 %v337_v0  ;;  %1591 = vmatpush.msra.mxu1 %v242_v1  ;;  %v348_v34 = vld [vmem:[#allocation5 + $0x3d0] sm:$0xff]  ;;  %v331_v40 = vld [vmem:[#allocation5 + $0x348] sm:$0xff]  ;;  %v1211_v44 = vld [vmem:[%s3144_s6 + $0x100] sm:$0xff] }
  0x49   : > { %1739 = vmatpush.msra.mxu3 %v274_v2  ;;  %1592 = vmatmul.f32.vlgmr.msra.gmra.mxu1 %v1180_v3  ;;  %v316_v35 = vld [vmem:[#allocation5 + $0x2d0] sm:$0xff]  ;;  %v299_v41 = vld [vmem:[#allocation5 + $0x248] sm:$0xff]  ;;  %v1214_v47 = vld [vmem:[%s3144_s6 + $0x118] sm:$0xff] }
  0x4a   : > { %1740 = vmatmul.f32.vlgmr.msra.gmra.mxu3 %v1182_v4  ;;  %1798 = vmatpush.msrb.mxu0 %v305_v5  ;;  %v1205_v37 = vld [vmem:[%s3144_s6 + $0xd0] sm:$0xff]  ;;  %v347_v42 = vld [vmem:[#allocation5 + $0x3c8] sm:$0xff]  ;;  %v330_v48 = vld [vmem:[#allocation5 + $0x340] sm:$0xff] }
  0x4b   : > { %2020 = vmatpush.msrb.mxu3 %v353_v6  ;;  %1872 = vmatpush.msrb.mxu1 %v321_v7  ;;  %v315_v43 = vld [vmem:[#allocation5 + $0x2c8] sm:$0xff]  ;;  %v1213_v45 = vld [vmem:[%s3144_s6 + $0x110] sm:$0xff]  ;;  %v298_v49 = vld [vmem:[#allocation5 + $0x240] sm:$0xff] }
  0x4c   : > { %1947 = vmatpush.msrb.mxu2 %v336_v8  ;;  %1799 = vmatpush.msrb.mxu0 %v304_v9  ;;  %v1212_v46 = vld [vmem:[%s3144_s6 + $0x108] sm:$0xff]  ;;  %v346_v50 = vld [vmem:[#allocation5 + $0x3c0] sm:$0xff]  ;;  %v1221_v53 = vld [vmem:[%s3144_s6 + $0x150] sm:$0xff] }
  0x4d   : > { %2021 = vmatpush.msrb.mxu3 %v352_v10  ;;  %1873 = vmatpush.msrb.mxu1 %v320_v11  ;;  %v314_v51 = vld [vmem:[#allocation5 + $0x2c0] sm:$0xff]  ;;  %v1220_v54 = vld [vmem:[%s3144_s6 + $0x148] sm:$0xff]  ;;  %v1222_v55 = vld [vmem:[%s3144_s6 + $0x158] sm:$0xff] }
  0x4e   : > { %1948 = vmatpush.msrb.mxu2 %v335_v12  ;;  %1800 = vmatpush.msrb.mxu0 %v303_v13  ;;  %v1219_v52 = vld [vmem:[%s3144_s6 + $0x140] sm:$0xff]  ;;  %v329_v56 = vld [vmem:[#allocation5 + $0x338] sm:$0xff]  ;;  %v1229_v60 = vld [vmem:[%s3144_s6 + $0x190] sm:$0xff] }
  0x4f   : > { %1521 = vmatmul.f32.gmra.mxu0 %v1187_v14  ;;  %1669 = vmatmul.f32.gmra.mxu2 %v1189_v15  ;;  %v297_v57 = vld [vmem:[#allocation5 + $0x238] sm:$0xff]  ;;  %v1227_v59 = vld [vmem:[%s3144_s6 + $0x180] sm:$0xff]  ;;  %v1228_v61 = vld [vmem:[%s3144_s6 + $0x188] sm:$0xff] }
  0x50   : > { %2022 = vmatpush.msrb.mxu3 %v351_v16  ;;  %1874 = vmatpush.msrb.mxu1 %v319_v17  ;;  %v345_v58 = vld [vmem:[#allocation5 + $0x3b8] sm:$0xff]  ;;  %v328_v0 = vld [vmem:[#allocation5 + $0x330] sm:$0xff]  ;;  %v1235_v1 = vld [vmem:[%s3144_s6 + $0x1c0] sm:$0xff] }
  0x51   : > { %1595 = vmatmul.f32.gmra.mxu1 %v1188_v18  ;;  %1949 = vmatpush.msrb.mxu2 %v334_v19  ;;  %v1230_v62 = vld [vmem:[%s3144_s6 + $0x198] sm:$0xff]  ;;  %v1237_v2 = vld [vmem:[%s3144_s6 + $0x1d0] sm:$0xff]  ;;  %v1236_v3 = vld [vmem:[%s3144_s6 + $0x1c8] sm:$0xff] }
  0x52   : > { %1743 = vmatmul.f32.gmra.mxu3 %v1190_v20  ;;  %1801 = vmatpush.msrb.mxu0 %v302_v21  ;;  %v313_v63 = vld [vmem:[#allocation5 + $0x2b8] sm:$0xff]  ;;  %v296_v5 = vld [vmem:[#allocation5 + $0x230] sm:$0xff]  ;;  %v327_v8 = vld [vmem:[#allocation5 + $0x328] sm:$0xff] }
  0x53   : > { %2023 = vmatpush.msrb.mxu3 %v350_v22  ;;  %1875 = vmatpush.msrb.mxu1 %v318_v23  ;;  %v1238_v4 = vld [vmem:[%s3144_s6 + $0x1d8] sm:$0xff]  ;;  %v344_v6 = vld [vmem:[#allocation5 + $0x3b0] sm:$0xff]  ;;  %v1243_v9 = vld [vmem:[%s3144_s6 + $0x200] sm:$0xff] }
  0x54   : > { %1950 = vmatpush.msrb.mxu2 %v333_v24  ;;  %1802 = vmatpush.msrb.mxu0 %v301_v25  ;;  %v312_v7 = vld [vmem:[#allocation5 + $0x2b0] sm:$0xff]  ;;  %v1244_v11 = vld [vmem:[%s3144_s6 + $0x208] sm:$0xff]  ;;  %v1246_v12 = vld [vmem:[%s3144_s6 + $0x218] sm:$0xff] }
  0x55   : > { %2024 = vmatpush.msrb.mxu3 %v349_v26  ;;  %1876 = vmatpush.msrb.mxu1 %v317_v27  ;;  %v1245_v10 = vld [vmem:[%s3144_s6 + $0x210] sm:$0xff]  ;;  %v295_v13 = vld [vmem:[#allocation5 + $0x228] sm:$0xff]  ;;  %v1251_v16 = vld [vmem:[%s3144_s6 + $0x240] sm:$0xff] }
  0x56   : > { %1951 = vmatpush.msrb.mxu2 %v332_v32  ;;  %1803 = vmatpush.msrb.mxu0 %v300_v33  ;;  %v343_v14 = vld [vmem:[#allocation5 + $0x3a8] sm:$0xff]  ;;  %v1253_v17 = vld [vmem:[%s3144_s6 + $0x250] sm:$0xff]  ;;  %v1254_v19 = vld [vmem:[%s3144_s6 + $0x258] sm:$0xff] }
  0x57   : > { %1524 = vmatmul.f32.gmra.mxu0 %v1195_v28  ;;  %1672 = vmatmul.f32.gmra.mxu2 %v1197_v29  ;;  %v311_v15 = vld [vmem:[#allocation5 + $0x2a8] sm:$0xff]  ;;  %v326_v20 = vld [vmem:[#allocation5 + $0x320] sm:$0xff]  ;;  %v1261_v25 = vld [vmem:[%s3144_s6 + $0x290] sm:$0xff] }
  0x58   : > { %2025 = vmatpush.msrb.mxu3 %v348_v34  ;;  %1877 = vmatpush.msrb.mxu1 %v316_v35  ;;  %v1252_v18 = vld [vmem:[%s3144_s6 + $0x248] sm:$0xff]  ;;  %v294_v21 = vld [vmem:[#allocation5 + $0x220] sm:$0xff]  ;;  %v1262_v27 = vld [vmem:[%s3144_s6 + $0x298] sm:$0xff] }
  0x59   : > { %1598 = vmatmul.f32.gmra.mxu1 %v1196_v30  ;;  %1952 = vmatpush.msrb.mxu2 %v331_v40  ;;  %v342_v22 = vld [vmem:[#allocation5 + $0x3a0] sm:$0xff]  ;;  %v1260_v26 = vld [vmem:[%s3144_s6 + $0x288] sm:$0xff]  ;;  %v325_v28 = vld [vmem:[#allocation5 + $0x318] sm:$0xff] }
  0x5a   : > { %1746 = vmatmul.f32.gmra.mxu3 %v1198_v31  ;;  %1804 = vmatpush.msrb.mxu0 %v299_v41  ;;  %v310_v23 = vld [vmem:[#allocation5 + $0x2a0] sm:$0xff]  ;;  %v293_v29 = vld [vmem:[#allocation5 + $0x218] sm:$0xff]  ;;  %v1269_v33 = vld [vmem:[%s3144_s6 + $0x2d0] sm:$0xff] }
  0x5b   : > { %2026 = vmatpush.msrb.mxu3 %v347_v42  ;;  %1878 = vmatpush.msrb.mxu1 %v315_v43  ;;  %v1259_v24 = vld [vmem:[%s3144_s6 + $0x280] sm:$0xff]  ;;  %v341_v30 = vld [vmem:[#allocation5 + $0x398] sm:$0xff]  ;;  %v1268_v34 = vld [vmem:[%s3144_s6 + $0x2c8] sm:$0xff] }
  0x5c   : > { %1953 = vmatpush.msrb.mxu2 %v330_v48  ;;  %1805 = vmatpush.msrb.mxu0 %v298_v49  ;;  %v309_v31 = vld [vmem:[#allocation5 + $0x298] sm:$0xff]  ;;  %v1267_v32 = vld [vmem:[%s3144_s6 + $0x2c0] sm:$0xff]  ;;  %v340_v40 = vld [vmem:[#allocation5 + $0x390] sm:$0xff] }
  0x5d   : > { %2027 = vmatpush.msrb.mxu3 %v346_v50  ;;  %1879 = vmatpush.msrb.mxu1 %v314_v51  ;;  %v1270_v35 = vld [vmem:[%s3144_s6 + $0x2d8] sm:$0xff]  ;;  %v1276_v41 = vld [vmem:[%s3144_s6 + $0x308] sm:$0xff]  ;;  %v308_v43 = vld [vmem:[#allocation5 + $0x290] sm:$0xff] }
  0x5e   : > { %1954 = vmatpush.msrb.mxu2 %v329_v56  ;;  %1806 = vmatpush.msrb.mxu0 %v297_v57  ;;  %v1278_v42 = vld [vmem:[%s3144_s6 + $0x318] sm:$0xff]  ;;  %v291_v49 = vld [vmem:[#allocation5 + $0x208] sm:$0xff]  ;;  %v322_v56 = vld [vmem:[#allocation5 + $0x300] sm:$0xff] }
  0x5f   : > { %1527 = vmatmul.f32.gmra.mxu0 %v1203_v36  ;;  %1675 = vmatmul.f32.gmra.mxu2 %v1205_v37  ;;  %v324_v36 = vld [vmem:[#allocation5 + $0x310] sm:$0xff]  ;;  %v1275_v37 = vld [vmem:[%s3144_s6 + $0x300] sm:$0xff]  ;;  %v1286_v48 = vld [vmem:[%s3144_s6 + $0x358] sm:$0xff] }
  0x60   : > { %2028 = vmatpush.msrb.mxu3 %v345_v58  ;;  %1880 = vmatpush.msrb.mxu1 %v313_v63  ;;  %v339_v50 = vld [vmem:[#allocation5 + $0x388] sm:$0xff]  ;;  %v290_v57 = vld [vmem:[#allocation5 + $0x200] sm:$0xff]  ;;  %v1302_v63 = vld [vmem:[%s3144_s6 + $0x3d8] sm:$0xff] }
  0x61   : > { %1601 = vmatmul.f32.gmra.mxu1 %v1204_v38  ;;  %1955 = vmatpush.msrb.mxu2 %v328_v0  ;;  %v1277_v38 = vld [vmem:[%s3144_s6 + $0x310] sm:$0xff]  ;;  %v307_v51 = vld [vmem:[#allocation5 + $0x288] sm:$0xff]  ;;  %v338_v58 = vld [vmem:[#allocation5 + $0x380] sm:$0xff] }
  0x62   : > { %1749 = vmatmul.f32.gmra.mxu3 %v1206_v39  ;;  %1807 = vmatpush.msrb.mxu0 %v296_v5  ;;  %v292_v39 = vld [vmem:[#allocation5 + $0x210] sm:$0xff]  ;;  %v1310_v5 = vld [vmem:[%s3144_s6 + $0x418] sm:$0xff] }
  0x63   : > { %2029 = vmatpush.msrb.mxu3 %v344_v6  ;;  %1881 = vmatpush.msrb.mxu1 %v312_v7 }
  0x64   : > { %1956 = vmatpush.msrb.mxu2 %v327_v8  ;;  %1808 = vmatpush.msrb.mxu0 %v295_v13 }
  0x65   : > { %2030 = vmatpush.msrb.mxu3 %v343_v14  ;;  %1882 = vmatpush.msrb.mxu1 %v311_v15  ;;  %v1316_v15 = vld [vmem:[%s3144_s6 + $0x448] sm:$0xff] }
  0x66   : > { %1957 = vmatpush.msrb.mxu2 %v326_v20  ;;  %1809 = vmatpush.msrb.mxu0 %v294_v21  ;;  %v1162_v20 = vlaneseq }
  0x67   : > { %1530 = vmatmul.f32.gmra.mxu0 %v1211_v44  ;;  %1678 = vmatmul.f32.gmra.mxu2 %v1213_v45  ;;  %v1283_v44 = vld [vmem:[%s3144_s6 + $0x340] sm:$0xff]  ;;  %v1285_v45 = vld [vmem:[%s3144_s6 + $0x350] sm:$0xff] }
  0x68   : > { %2031 = vmatpush.msrb.mxu3 %v342_v22  ;;  %1883 = vmatpush.msrb.mxu1 %v310_v23  ;;  %v1323_v22 = vld [vmem:[%s3144_s6 + $0x480] sm:$0xff]  ;;  %v1325_v23 = vld [vmem:[%s3144_s6 + $0x490] sm:$0xff] }
  0x69   : > { %1604 = vmatmul.f32.gmra.mxu1 %v1212_v46  ;;  %1958 = vmatpush.msrb.mxu2 %v325_v28  ;;  %v1284_v46 = vld [vmem:[%s3144_s6 + $0x348] sm:$0xff]  ;;  %v1326_v28 = vld [vmem:[%s3144_s6 + $0x498] sm:$0xff] }
  0x6a   : > { %1752 = vmatmul.f32.gmra.mxu3 %v1214_v47  ;;  %1810 = vmatpush.msrb.mxu0 %v293_v29  ;;  %v323_v47 = vld [vmem:[#allocation5 + $0x308] sm:$0xff]  ;;  %v3234_v29 = vand.u32 127, %v1162_v20 }
  0x6b   : > { %2032 = vmatpush.msrb.mxu3 %v341_v30  ;;  %1884 = vmatpush.msrb.mxu1 %v309_v31 }
  0x6c   : > { %1959 = vmatpush.msrb.mxu2 %v324_v36  ;;  %1811 = vmatpush.msrb.mxu0 %v292_v39  ;;  %v1185_v36 = vld [vmem:[%s3144_s6 + $0x30] sm:$0xff]  ;;  %vm2151_vm1 = vcmp.eq.s32.totalorder %v3234_v29, 96  ;;  %vm2209_vm2 = vcmp.lt.s32.totalorder %v3234_v29, 96 }
  0x6d   : > { %2033 = vmatpush.msrb.mxu3 %v340_v40  ;;  %1885 = vmatpush.msrb.mxu1 %v308_v43  ;;  %v1184_v40 = vld [vmem:[%s3144_s6 + $0x28] sm:$0xff] }
  0x6e   : > { %1960 = vmatpush.msrb.mxu2 %v323_v47  ;;  %1812 = vmatpush.msrb.mxu0 %v291_v49  ;;  %v1193_v47 = vld [vmem:[%s3144_s6 + $0x70] sm:$0xff] }
  0x6f   : > { %1533 = vmatmul.f32.gmra.mxu0 %v1219_v52  ;;  %1681 = vmatmul.f32.gmra.mxu2 %v1221_v53  ;;  %v1291_v52 = vld [vmem:[%s3144_s6 + $0x380] sm:$0xff]  ;;  %v1293_v53 = vld [vmem:[%s3144_s6 + $0x390] sm:$0xff] }
  0x70   : > { %2034 = vmatpush.msrb.mxu3 %v339_v50  ;;  %1886 = vmatpush.msrb.mxu1 %v307_v51  ;;  %v1192_v51 = vld [vmem:[%s3144_s6 + $0x68] sm:$0xff] }
  0x71   : > { %1607 = vmatmul.f32.gmra.mxu1 %v1220_v54  ;;  %v1292_v54 = vld [vmem:[%s3144_s6 + $0x388] sm:$0xff]  ;;  %1961 = vmatpush.msrb.mxu2 %v322_v56 }
  0x72   : > { %1755 = vmatmul.f32.gmra.mxu3 %v1222_v55  ;;  %v1294_v55 = vld [vmem:[%s3144_s6 + $0x398] sm:$0xff]  ;;  %1813 = vmatpush.msrb.mxu0 %v290_v57  ;;  %v1199_v57 = vld [vmem:[%s3144_s6 + $0xa0] sm:$0xff] }
  0x73   : > { %2035 = vmatpush.msrb.mxu3 %v338_v58  ;;  %v1201_v58 = vld [vmem:[%s3144_s6 + $0xb0] sm:$0xff] }
  0x77   : > { %1536 = vmatmul.f32.gmra.mxu0 %v1227_v59  ;;  %1684 = vmatmul.f32.gmra.mxu2 %v1229_v60  ;;  %v306_v59 = vld [vmem:[#allocation5 + $0x280] sm:$0xff] }
  0x78   : > { %v1299_v60 = vld [vmem:[%s3144_s6 + $0x3c0] sm:$0xff]  ;;  %1887 = vmatpush.msrb.mxu1 %v306_v59 }
  0x79   : > { %1610 = vmatmul.f32.gmra.mxu1 %v1228_v61  ;;  %v1301_v61 = vld [vmem:[%s3144_s6 + $0x3d0] sm:$0xff] }
  0x7a   : > { %1758 = vmatmul.f32.gmra.mxu3 %v1230_v62  ;;  %v1300_v62 = vld [vmem:[%s3144_s6 + $0x3c8] sm:$0xff] }
  0x7f   : > { %1539 = vmatmul.f32.gmra.mxu0 %v1235_v1  ;;  %1687 = vmatmul.f32.gmra.mxu2 %v1237_v2  ;;  %v1307_v1 = vld [vmem:[%s3144_s6 + $0x400] sm:$0xff]  ;;  %v1309_v2 = vld [vmem:[%s3144_s6 + $0x410] sm:$0xff] }
  0x81   : > { %1613 = vmatmul.f32.gmra.mxu1 %v1236_v3 }
  0x82   : > { %1761 = vmatmul.f32.gmra.mxu3 %v1238_v4  ;;  %v1308_v4 = vld [vmem:[%s3144_s6 + $0x408] sm:$0xff] }
  0x87   : > { %1542 = vmatmul.f32.gmra.mxu0 %v1243_v9  ;;  %1690 = vmatmul.f32.gmra.mxu2 %v1245_v10  ;;  %v1315_v10 = vld [vmem:[%s3144_s6 + $0x440] sm:$0xff] }
  0x89   : > { %1616 = vmatmul.f32.gmra.mxu1 %v1244_v11  ;;  %v1317_v11 = vld [vmem:[%s3144_s6 + $0x450] sm:$0xff] }
  0x8a   : > { %1764 = vmatmul.f32.gmra.mxu3 %v1246_v12 }
  0x8f   : > { %1545 = vmatmul.f32.gmra.mxu0 %v1251_v16  ;;  %1693 = vmatmul.f32.gmra.mxu2 %v1253_v17  ;;  %v1318_v16 = vld [vmem:[%s3144_s6 + $0x458] sm:$0xff] }
  0x91   : > { %1619 = vmatmul.f32.gmra.mxu1 %v1252_v18 }
  0x92   : > { %1767 = vmatmul.f32.gmra.mxu3 %v1254_v19 }
  0x97   : > { %1548 = vmatmul.f32.gmra.mxu0 %v1259_v24  ;;  %1696 = vmatmul.f32.gmra.mxu2 %v1261_v25 }
  0x99   : > { %1622 = vmatmul.f32.gmra.mxu1 %v1260_v26 }
  0x9a   : > { %1770 = vmatmul.f32.gmra.mxu3 %v1262_v27  ;;  %v1324_v27 = vld [vmem:[%s3144_s6 + $0x488] sm:$0xff] }
  0x9f   : > { %1551 = vmatmul.f32.gmra.mxu0 %v1267_v32  ;;  %1699 = vmatmul.f32.gmra.mxu2 %v1269_v33  ;;  %v3237_v33 = vadd.s32 896, %v3234_v29 }
  0xa1   : > { %1625 = vmatmul.f32.gmra.mxu1 %v1268_v34  ;;  %vm1178_vm0 = vcmp.lt.s32.totalorder %v3237_v33, 1000 }
  0xa2   : > { %1773 = vmatmul.f32.gmra.mxu3 %v1270_v35  ;;  %v1183_v35 = vld [vmem:[%s3144_s6 + $0x20] sm:$0xff] }
  0xa7   : > { %1554 = vmatmul.f32.gmra.mxu0 %v1275_v37  ;;  %1702 = vmatmul.f32.gmra.mxu2 %v1277_v38 }
  0xa9   : > { %1628 = vmatmul.f32.gmra.mxu1 %v1276_v41  ;;  %v1186_v41 = vld [vmem:[%s3144_s6 + $0x38] sm:$0xff] }
  0xaa   : > { %1776 = vmatmul.f32.gmra.mxu3 %v1278_v42 }
  0xaf   : > { %1557 = vmatmul.f32.gmra.mxu0 %v1283_v44  ;;  %1705 = vmatmul.f32.gmra.mxu2 %v1285_v45 }
  0xb1   : > { %1631 = vmatmul.f32.gmra.mxu1 %v1284_v46  ;;  %v1191_v46 = vld [vmem:[%s3144_s6 + $0x60] sm:$0xff] }
  0xb2   : > { %1779 = vmatmul.f32.gmra.mxu3 %v1286_v48 }
  0xb7   : > { %1560 = vmatmul.f32.gmra.mxu0 %v1291_v52  ;;  %1708 = vmatmul.f32.gmra.mxu2 %v1293_v53  ;;  %v1194_v52 = vld [vmem:[%s3144_s6 + $0x78] sm:$0xff] }
  0xb9   : > { %1634 = vmatmul.f32.gmra.mxu1 %v1292_v54 }
  0xba   : > { %1782 = vmatmul.f32.gmra.mxu3 %v1294_v55 }
  0xbf   : > { %1563 = vmatmul.f32.gmra.mxu0 %v1299_v60  ;;  %1711 = vmatmul.f32.gmra.mxu2 %v1301_v61 }
  0xc1   : > { %1637 = vmatmul.f32.gmra.mxu1 %v1300_v62  ;;  %v1200_v62 = vld [vmem:[%s3144_s6 + $0xa8] sm:$0xff] }
  0xc2   : > { %1785 = vmatmul.f32.gmra.mxu3 %v1302_v63  ;;  %v1202_v63 = vld [vmem:[%s3144_s6 + $0xb8] sm:$0xff] }
  0xc4   : > { %v1519_v0 = vpop.f32.mrf.mxu0 }
  0xc6   : > { %v1593_v3 = vpop.f32.mrf.mxu1 }
  0xc7   : > { %1566 = vmatmul.f32.gmra.mxu0 %v1307_v1  ;;  %1714 = vmatmul.f32.gmra.mxu2 %v1309_v2  ;;  %v1594_v6 = vadd.f32 %v1593_v3, %v1519_v0 }
  0xc9   : > { %1640 = vmatmul.f32.gmra.mxu1 %v1308_v4  ;;  %v1207_v4 = vld [vmem:[%s3144_s6 + $0xe0] sm:$0xff] }
  0xca   : > { %1788 = vmatmul.f32.gmra.mxu3 %v1310_v5  ;;  %v1667_v7 = vpop.f32.mrf.mxu2  ;;  %v1209_v5 = vld [vmem:[%s3144_s6 + $0xf0] sm:$0xff] }
  0xcb   : > { %v1668_v8 = vadd.f32 %v1667_v7, %v1594_v6 }
  0xcc   : > { %v1522_v9 = vpop.f32.mrf.mxu0 }
  0xcd   : > { %v1741_v12 = vpop.f32.mrf.mxu3 }
  0xce   : > { %v3224_v13 = vadd.f32 %v1741_v12, %v1668_v8  ;;  %v1596_v14 = vpop.f32.mrf.mxu1 }
  0xcf   : > { %1569 = vmatmul.f32.gmra.mxu0 %v1315_v10  ;;  %1717 = vmatmul.f32.gmra.mxu2 %v1317_v11  ;;  %v1597_v17 = vadd.f32 %v1596_v14, %v1522_v9  ;;  %v1208_v9 = vld [vmem:[%s3144_s6 + $0xe8] sm:$0xff]  ;;  %v1210_v10 = vld [vmem:[%s3144_s6 + $0xf8] sm:$0xff] }
  0xd1   : > { %1643 = vmatmul.f32.gmra.mxu1 %v1316_v15 }
  0xd2   : > { %1791 = vmatmul.f32.gmra.mxu3 %v1318_v16  ;;  %v1670_v18 = vpop.f32.mrf.mxu2  ;;  %v1215_v16 = vld [vmem:[%s3144_s6 + $0x120] sm:$0xff] }
  0xd3   : > { %v1671_v19 = vadd.f32 %v1670_v18, %v1597_v17  ;;  %v1217_v17 = vld [vmem:[%s3144_s6 + $0x130] sm:$0xff] }
  0xd4   : > { %v1525_v21 = vpop.f32.mrf.mxu0 }
  0xd5   : > { %v1744_v24 = vpop.f32.mrf.mxu3 }
  0xd6   : > { %v3230_v25 = vadd.f32 %v1744_v24, %v1671_v19  ;;  %v1599_v26 = vpop.f32.mrf.mxu1 }
  0xd7   : > { %1572 = vmatmul.f32.gmra.mxu0 %v1323_v22  ;;  %1720 = vmatmul.f32.gmra.mxu2 %v1325_v23  ;;  %v1600_v30 = vadd.f32 %v1599_v26, %v1525_v21  ;;  %v1216_v21 = vld [vmem:[%s3144_s6 + $0x128] sm:$0xff]  ;;  %v1218_v22 = vld [vmem:[%s3144_s6 + $0x138] sm:$0xff] }
  0xd9   : > { %1646 = vmatmul.f32.gmra.mxu1 %v1324_v27 }
  0xda   : > { %1794 = vmatmul.f32.gmra.mxu3 %v1326_v28  ;;  %v1673_v31 = vpop.f32.mrf.mxu2  ;;  %v1223_v28 = vld [vmem:[%s3144_s6 + $0x160] sm:$0xff] }
  0xdb   : > { %v1674_v32 = vadd.f32 %v1673_v31, %v1600_v30  ;;  %v1225_v30 = vld [vmem:[%s3144_s6 + $0x170] sm:$0xff] }
  0xdc   : > { %v1528_v34 = vpop.f32.mrf.mxu0 }
  0xdd   : > { %v1747_v37 = vpop.f32.mrf.mxu3 }
  0xde   : > { %v3241_v38 = vadd.f32 %v1747_v37, %v1674_v32  ;;  %v1602_v39 = vpop.f32.mrf.mxu1 }
  0xdf   : > { %1814 = vmatmul.f32.vlgmr.msrb.gmra.mxu0 %v1183_v35  ;;  %1962 = vmatmul.f32.vlgmr.msrb.gmra.mxu2 %v1185_v36  ;;  %v1603_v42 = vadd.f32 %v1602_v39, %v1528_v34  ;;  %v1224_v35 = vld [vmem:[%s3144_s6 + $0x168] sm:$0xff]  ;;  %v1226_v36 = vld [vmem:[%s3144_s6 + $0x178] sm:$0xff] }
  0xe1   : > { %1888 = vmatmul.f32.vlgmr.msrb.gmra.mxu1 %v1184_v40 }
  0xe2   : > { %2692 = vmatmul.msk.f32.vlgmr.msrb.gmra.mxu3 %vm1178_vm0, %v1186_v41  ;;  %v1676_v43 = vpop.f32.mrf.mxu2 }
  0xe3   : > { %v1677_v44 = vadd.f32 %v1676_v43, %v1603_v42  ;;  %v1231_v42 = vld [vmem:[%s3144_s6 + $0x1a0] sm:$0xff]  ;;  %v1233_v43 = vld [vmem:[%s3144_s6 + $0x1b0] sm:$0xff] }
  0xe4   : > { %v1531_v45 = vpop.f32.mrf.mxu0 }
  0xe5   : > { %v1750_v48 = vpop.f32.mrf.mxu3 }
  0xe6   : > { %v3250_v49 = vadd.f32 %v1750_v48, %v1677_v44  ;;  %v1605_v50 = vpop.f32.mrf.mxu1  ;;  %v1234_v48 = vld [vmem:[%s3144_s6 + $0x1b8] sm:$0xff] }
  0xe7   : > { %1817 = vmatmul.f32.gmra.mxu0 %v1191_v46  ;;  %1965 = vmatmul.f32.gmra.mxu2 %v1193_v47  ;;  %v1606_v53 = vadd.f32 %v1605_v50, %v1531_v45  ;;  %v1232_v47 = vld [vmem:[%s3144_s6 + $0x1a8] sm:$0xff] }
  0xe9   : > { %1891 = vmatmul.f32.gmra.mxu1 %v1192_v51 }
  0xea   : > { %2693 = vmatmul.msk.f32.gmra.mxu3 %vm1178_vm0, %v1194_v52  ;;  %v1679_v54 = vpop.f32.mrf.mxu2 }
  0xeb   : > { %v1680_v55 = vadd.f32 %v1679_v54, %v1606_v53  ;;  %v1239_v54 = vld [vmem:[%s3144_s6 + $0x1e0] sm:$0xff] }
  0xec   : > { %v1534_v56 = vpop.f32.mrf.mxu0 }
  0xed   : > { %v1753_v59 = vpop.f32.mrf.mxu3 }
  0xee   : > { %v3258_v60 = vadd.f32 %v1753_v59, %v1680_v55  ;;  %v1608_v61 = vpop.f32.mrf.mxu1  ;;  %v1241_v55 = vld [vmem:[%s3144_s6 + $0x1f0] sm:$0xff]  ;;  %v1240_v59 = vld [vmem:[%s3144_s6 + $0x1e8] sm:$0xff] }
  0xef   : > { %1820 = vmatmul.f32.gmra.mxu0 %v1199_v57  ;;  %1968 = vmatmul.f32.gmra.mxu2 %v1201_v58  ;;  %v1609_v0 = vadd.f32 %v1608_v61, %v1534_v56  ;;  %v1242_v61 = vld [vmem:[%s3144_s6 + $0x1f8] sm:$0xff] }
  0xf1   : > { %1894 = vmatmul.f32.gmra.mxu1 %v1200_v62 }
  0xf2   : > { %2694 = vmatmul.msk.f32.gmra.mxu3 %vm1178_vm0, %v1202_v63  ;;  %v1682_v1 = vpop.f32.mrf.mxu2 }
  0xf3   : > { %v1683_v2 = vadd.f32 %v1682_v1, %v1609_v0 }
  0xf4   : > { %v1537_v3 = vpop.f32.mrf.mxu0 }
  0xf5   : > { %v1756_v6 = vpop.f32.mrf.mxu3 }
  0xf6   : > { %v3266_v7 = vadd.f32 %v1756_v6, %v1683_v2  ;;  %v1611_v8 = vpop.f32.mrf.mxu1  ;;  %v1247_v2 = vld [vmem:[%s3144_s6 + $0x220] sm:$0xff] }
  0xf7   : > { %1823 = vmatmul.f32.gmra.mxu0 %v1207_v4  ;;  %1971 = vmatmul.f32.gmra.mxu2 %v1209_v5  ;;  %v1612_v11 = vadd.f32 %v1611_v8, %v1537_v3  ;;  %v1249_v3 = vld [vmem:[%s3144_s6 + $0x230] sm:$0xff]  ;;  %v1248_v8 = vld [vmem:[%s3144_s6 + $0x228] sm:$0xff] }
  0xf9   : > { %1897 = vmatmul.f32.gmra.mxu1 %v1208_v9  ;;  %v1250_v9 = vld [vmem:[%s3144_s6 + $0x238] sm:$0xff] }
  0xfa   : > { %2695 = vmatmul.msk.f32.gmra.mxu3 %vm1178_vm0, %v1210_v10  ;;  %v1685_v12 = vpop.f32.mrf.mxu2 }
  0xfb   : > { %v1686_v14 = vadd.f32 %v1685_v12, %v1612_v11 }
  0xfc   : > { %v1540_v15 = vpop.f32.mrf.mxu0 }
  0xfd   : > { %v1759_v18 = vpop.f32.mrf.mxu3 }
  0xfe   : > { %v3274_v19 = vadd.f32 %v1759_v18, %v1686_v14  ;;  %v1614_v20 = vpop.f32.mrf.mxu1 }
  0xff   : > { %1826 = vmatmul.f32.gmra.mxu0 %v1215_v16  ;;  %1974 = vmatmul.f32.gmra.mxu2 %v1217_v17  ;;  %v1615_v23 = vadd.f32 %v1614_v20, %v1540_v15  ;;  %v1255_v15 = vld [vmem:[%s3144_s6 + $0x260] sm:$0xff]  ;;  %v1257_v16 = vld [vmem:[%s3144_s6 + $0x270] sm:$0xff] }
 0x101   : > { %1900 = vmatmul.f32.gmra.mxu1 %v1216_v21  ;;  %v1256_v21 = vld [vmem:[%s3144_s6 + $0x268] sm:$0xff] }
 0x102   : > { %2696 = vmatmul.msk.f32.gmra.mxu3 %vm1178_vm0, %v1218_v22  ;;  %v1688_v24 = vpop.f32.mrf.mxu2  ;;  %v1258_v22 = vld [vmem:[%s3144_s6 + $0x278] sm:$0xff] }
 0x103   : > { %v1689_v26 = vadd.f32 %v1688_v24, %v1615_v23 }
 0x104   : > { %v1543_v27 = vpop.f32.mrf.mxu0 }
 0x105   : > { %v1762_v31 = vpop.f32.mrf.mxu3 }
 0x106   : > { %v3282_v32 = vadd.f32 %v1762_v31, %v1689_v26  ;;  %v1617_v34 = vpop.f32.mrf.mxu1 }
 0x107   : > { %1829 = vmatmul.f32.gmra.mxu0 %v1223_v28  ;;  %1977 = vmatmul.f32.gmra.mxu2 %v1225_v30  ;;  %v1618_v37 = vadd.f32 %v1617_v34, %v1543_v27  ;;  %v1263_v28 = vld [vmem:[%s3144_s6 + $0x2a0] sm:$0xff]  ;;  %v1265_v30 = vld [vmem:[%s3144_s6 + $0x2b0] sm:$0xff] }
 0x109   : > { %1903 = vmatmul.f32.gmra.mxu1 %v1224_v35 }
 0x10a   : > { %2697 = vmatmul.msk.f32.gmra.mxu3 %vm1178_vm0, %v1226_v36  ;;  %v1691_v39 = vpop.f32.mrf.mxu2  ;;  %v1264_v36 = vld [vmem:[%s3144_s6 + $0x2a8] sm:$0xff] }
 0x10b   : > { %v1692_v40 = vadd.f32 %v1691_v39, %v1618_v37  ;;  %v1266_v37 = vld [vmem:[%s3144_s6 + $0x2b8] sm:$0xff] }
 0x10c   : > { %v1546_v41 = vpop.f32.mrf.mxu0 }
 0x10d   : > { %v1765_v44 = vpop.f32.mrf.mxu3 }
 0x10e   : > { %v3290_v45 = vadd.f32 %v1765_v44, %v1692_v40  ;;  %v1620_v46 = vpop.f32.mrf.mxu1  ;;  %v1273_v44 = vld [vmem:[%s3144_s6 + $0x2f0] sm:$0xff] }
 0x10f   : > { %1832 = vmatmul.f32.gmra.mxu0 %v1231_v42  ;;  %1980 = vmatmul.f32.gmra.mxu2 %v1233_v43  ;;  %v1621_v50 = vadd.f32 %v1620_v46, %v1546_v41  ;;  %v1271_v43 = vld [vmem:[%s3144_s6 + $0x2e0] sm:$0xff] }
 0x111   : > { %1906 = vmatmul.f32.gmra.mxu1 %v1232_v47 }
 0x112   : > { %2698 = vmatmul.msk.f32.gmra.mxu3 %vm1178_vm0, %v1234_v48  ;;  %v1694_v51 = vpop.f32.mrf.mxu2 }
 0x113   : > { %v1695_v52 = vadd.f32 %v1694_v51, %v1621_v50  ;;  %v1272_v50 = vld [vmem:[%s3144_s6 + $0x2e8] sm:$0xff] }
 0x114   : > { %v1549_v53 = vpop.f32.mrf.mxu0 }
 0x115   : > { %v1768_v56 = vpop.f32.mrf.mxu3 }
 0x116   : > { %v3298_v57 = vadd.f32 %v1768_v56, %v1695_v52  ;;  %v1623_v58 = vpop.f32.mrf.mxu1  ;;  %v1274_v52 = vld [vmem:[%s3144_s6 + $0x2f8] sm:$0xff]  ;;  %v1279_v56 = vld [vmem:[%s3144_s6 + $0x320] sm:$0xff] }
 0x117   : > { %1835 = vmatmul.f32.gmra.mxu0 %v1239_v54  ;;  %1983 = vmatmul.f32.gmra.mxu2 %v1241_v55  ;;  %v1624_v62 = vadd.f32 %v1623_v58, %v1549_v53  ;;  %v1281_v58 = vld [vmem:[%s3144_s6 + $0x330] sm:$0xff] }
 0x119   : > { %1909 = vmatmul.f32.gmra.mxu1 %v1240_v59 }
 0x11a   : > { %2699 = vmatmul.msk.f32.gmra.mxu3 %vm1178_vm0, %v1242_v61  ;;  %v1697_v63 = vpop.f32.mrf.mxu2 }
 0x11b   : > { %v1698_v0 = vadd.f32 %v1697_v63, %v1624_v62  ;;  %v1280_v63 = vld [vmem:[%s3144_s6 + $0x328] sm:$0xff] }
 0x11c   : > { %v1552_v1 = vpop.f32.mrf.mxu0 }
 0x11d   : > { %v1771_v4 = vpop.f32.mrf.mxu3 }
 0x11e   : > { %v3306_v5 = vadd.f32 %v1771_v4, %v1698_v0  ;;  %v1626_v6 = vpop.f32.mrf.mxu1 }
 0x11f   : > { %1838 = vmatmul.f32.gmra.mxu0 %v1247_v2  ;;  %1986 = vmatmul.f32.gmra.mxu2 %v1249_v3  ;;  %v1627_v10 = vadd.f32 %v1626_v6, %v1552_v1  ;;  %v1282_v1 = vld [vmem:[%s3144_s6 + $0x338] sm:$0xff]  ;;  %v1287_v6 = vld [vmem:[%s3144_s6 + $0x360] sm:$0xff] }
 0x121   : > { %1912 = vmatmul.f32.gmra.mxu1 %v1248_v8  ;;  %v1289_v8 = vld [vmem:[%s3144_s6 + $0x370] sm:$0xff] }
 0x122   : > { %2700 = vmatmul.msk.f32.gmra.mxu3 %vm1178_vm0, %v1250_v9  ;;  %v1700_v11 = vpop.f32.mrf.mxu2 }
 0x123   : > { %v1701_v12 = vadd.f32 %v1700_v11, %v1627_v10 }
 0x124   : > { %v1555_v14 = vpop.f32.mrf.mxu0 }
 0x125   : > { %v1774_v17 = vpop.f32.mrf.mxu3 }
 0x126   : > { %v3314_v18 = vadd.f32 %v1774_v17, %v1701_v12  ;;  %v1629_v20 = vpop.f32.mrf.mxu1  ;;  %v1288_v12 = vld [vmem:[%s3144_s6 + $0x368] sm:$0xff] }
 0x127   : > { %1841 = vmatmul.f32.gmra.mxu0 %v1255_v15  ;;  %1989 = vmatmul.f32.gmra.mxu2 %v1257_v16  ;;  %v1630_v23 = vadd.f32 %v1629_v20, %v1555_v14  ;;  %v1290_v15 = vld [vmem:[%s3144_s6 + $0x378] sm:$0xff] }
 0x129   : > { %1915 = vmatmul.f32.gmra.mxu1 %v1256_v21  ;;  %v1295_v21 = vld [vmem:[%s3144_s6 + $0x3a0] sm:$0xff] }
 0x12a   : > { %2701 = vmatmul.msk.f32.gmra.mxu3 %vm1178_vm0, %v1258_v22  ;;  %v1703_v24 = vpop.f32.mrf.mxu2  ;;  %v1297_v22 = vld [vmem:[%s3144_s6 + $0x3b0] sm:$0xff] }
 0x12b   : > { %v1704_v26 = vadd.f32 %v1703_v24, %v1630_v23 }
 0x12c   : > { %v1558_v27 = vpop.f32.mrf.mxu0 }
 0x12d   : > { %v1777_v31 = vpop.f32.mrf.mxu3 }
 0x12e   : > { %v3322_v34 = vadd.f32 %v1777_v31, %v1704_v26  ;;  %v1632_v35 = vpop.f32.mrf.mxu1 }
 0x12f   : > { %1844 = vmatmul.f32.gmra.mxu0 %v1263_v28  ;;  %1992 = vmatmul.f32.gmra.mxu2 %v1265_v30  ;;  %v1633_v39 = vadd.f32 %v1632_v35, %v1558_v27  ;;  %v1296_v27 = vld [vmem:[%s3144_s6 + $0x3a8] sm:$0xff]  ;;  %v1298_v30 = vld [vmem:[%s3144_s6 + $0x3b8] sm:$0xff] }
 0x131   : > { %1918 = vmatmul.f32.gmra.mxu1 %v1264_v36 }
 0x132   : > { %2702 = vmatmul.msk.f32.gmra.mxu3 %vm1178_vm0, %v1266_v37  ;;  %v1706_v40 = vpop.f32.mrf.mxu2  ;;  %v1303_v37 = vld [vmem:[%s3144_s6 + $0x3e0] sm:$0xff] }
 0x133   : > { %v1707_v41 = vadd.f32 %v1706_v40, %v1633_v39  ;;  %v1305_v39 = vld [vmem:[%s3144_s6 + $0x3f0] sm:$0xff] }
 0x134   : > { %v1561_v42 = vpop.f32.mrf.mxu0 }
 0x135   : > { %v1780_v46 = vpop.f32.mrf.mxu3 }
 0x136   : > { %v3330_v47 = vadd.f32 %v1780_v46, %v1707_v41  ;;  %v1635_v48 = vpop.f32.mrf.mxu1  ;;  %v1306_v46 = vld [vmem:[%s3144_s6 + $0x3f8] sm:$0xff] }
 0x137   : > { %v1636_v51 = vadd.f32 %v1635_v48, %v1561_v42  ;;  %1847 = vmatmul.f32.gmra.mxu0 %v1271_v43  ;;  %1995 = vmatmul.f32.gmra.mxu2 %v1273_v44  ;;  %v1304_v43 = vld [vmem:[%s3144_s6 + $0x3e8] sm:$0xff] }
 0x139   : > { %1921 = vmatmul.f32.gmra.mxu1 %v1272_v50 }
 0x13a   : > { %2703 = vmatmul.msk.f32.gmra.mxu3 %vm1178_vm0, %v1274_v52  ;;  %v1709_v53 = vpop.f32.mrf.mxu2  ;;  %v1311_v52 = vld [vmem:[%s3144_s6 + $0x420] sm:$0xff] }
 0x13b   : > { %v1710_v54 = vadd.f32 %v1709_v53, %v1636_v51  ;;  %v1313_v53 = vld [vmem:[%s3144_s6 + $0x430] sm:$0xff] }
 0x13c   : > { %v1564_v55 = vpop.f32.mrf.mxu0 }
 0x13d   : > { %v1783_v59 = vpop.f32.mrf.mxu3 }
 0x13e   : > { %v3338_v61 = vadd.f32 %v1783_v59, %v1710_v54  ;;  %v1638_v62 = vpop.f32.mrf.mxu1  ;;  %v1312_v59 = vld [vmem:[%s3144_s6 + $0x428] sm:$0xff] }
 0x13f   : > { %v1639_v0 = vadd.f32 %v1638_v62, %v1564_v55  ;;  %1850 = vmatmul.f32.gmra.mxu0 %v1279_v56  ;;  %1998 = vmatmul.f32.gmra.mxu2 %v1281_v58  ;;  %v1314_v62 = vld [vmem:[%s3144_s6 + $0x438] sm:$0xff] }
 0x141   : > { %1924 = vmatmul.f32.gmra.mxu1 %v1280_v63 }
 0x142   : > { %2704 = vmatmul.msk.f32.gmra.mxu3 %vm1178_vm0, %v1282_v1  ;;  %v1712_v2 = vpop.f32.mrf.mxu2 }
 0x143   : > { %v1713_v3 = vadd.f32 %v1712_v2, %v1639_v0 }
 0x144   : > { %v1567_v4 = vpop.f32.mrf.mxu0 }
 0x145   : > { %v1786_v9 = vpop.f32.mrf.mxu3 }
 0x146   : > { %v3346_v10 = vadd.f32 %v1786_v9, %v1713_v3  ;;  %v1641_v11 = vpop.f32.mrf.mxu1  ;;  %v1319_v3 = vld [vmem:[%s3144_s6 + $0x460] sm:$0xff] }
 0x147   : > { %v1642_v14 = vadd.f32 %v1641_v11, %v1567_v4  ;;  %1853 = vmatmul.f32.gmra.mxu0 %v1287_v6  ;;  %2001 = vmatmul.f32.gmra.mxu2 %v1289_v8  ;;  %v1321_v4 = vld [vmem:[%s3144_s6 + $0x470] sm:$0xff]  ;;  %v1320_v11 = vld [vmem:[%s3144_s6 + $0x468] sm:$0xff] }
 0x149   : > { %1927 = vmatmul.f32.gmra.mxu1 %v1288_v12  ;;  %v1322_v12 = vld [vmem:[%s3144_s6 + $0x478] sm:$0xff] }
 0x14a   : > { %2705 = vmatmul.msk.f32.gmra.mxu3 %vm1178_vm0, %v1290_v15  ;;  %v1715_v16 = vpop.f32.mrf.mxu2 }
 0x14b   : > { %v1716_v17 = vadd.f32 %v1715_v16, %v1642_v14 }
 0x14c   : > { %v1570_v20 = vpop.f32.mrf.mxu0 }
 0x14d   : > { %v1789_v23 = vpop.f32.mrf.mxu3 }
 0x14e   : > { %v3354_v24 = vadd.f32 %v1789_v23, %v1716_v17  ;;  %v1644_v26 = vpop.f32.mrf.mxu1 }
 0x14f   : > { %v1645_v28 = vadd.f32 %v1644_v26, %v1570_v20  ;;  %1856 = vmatmul.f32.gmra.mxu0 %v1295_v21  ;;  %2004 = vmatmul.f32.gmra.mxu2 %v1297_v22  ;;  %v1327_v20 = vld [vmem:[%s3144_s6 + $0x4a0] sm:$0xff]  ;;  %v1329_v21 = vld [vmem:[%s3144_s6 + $0x4b0] sm:$0xff] }
 0x151   : > { %1930 = vmatmul.f32.gmra.mxu1 %v1296_v27 }
 0x152   : > { %2706 = vmatmul.msk.f32.gmra.mxu3 %vm1178_vm0, %v1298_v30  ;;  %v1718_v31 = vpop.f32.mrf.mxu2  ;;  %v1330_v30 = vld [vmem:[%s3144_s6 + $0x4b8] sm:$0xff] }
 0x153   : > { %v1719_v35 = vadd.f32 %v1718_v31, %v1645_v28  ;;  %v1328_v28 = vld [vmem:[%s3144_s6 + $0x4a8] sm:$0xff] }
 0x154   : > { %v1573_v36 = vpop.f32.mrf.mxu0 }
 0x155   : > { %v1792_v40 = vpop.f32.mrf.mxu3 }
 0x156   : > { %v3362_v41 = vadd.f32 %v1792_v40, %v1719_v35  ;;  %v1647_v42 = vpop.f32.mrf.mxu1 }
 0x157   : > { %v1648_v44 = vadd.f32 %v1647_v42, %v1573_v36  ;;  %1859 = vmatmul.f32.gmra.mxu0 %v1303_v37  ;;  %2007 = vmatmul.f32.gmra.mxu2 %v1305_v39 }
 0x159   : > { %1933 = vmatmul.f32.gmra.mxu1 %v1304_v43 }
 0x15a   : > { %2707 = vmatmul.msk.f32.gmra.mxu3 %vm1178_vm0, %v1306_v46  ;;  %v1721_v48 = vpop.f32.mrf.mxu2 }
 0x15b   : > { %v1722_v50 = vadd.f32 %v1721_v48, %v1648_v44 }
 0x15c   : > { %v1815_v51 = vpop.f32.mrf.mxu0 }
 0x15d   : > { %v1795_v54 = vpop.f32.mrf.mxu3  ;;  %v1816_v55 = vadd.f32 %v1815_v51, %v3224_v13 }
 0x15e   : > { %v3371_v56 = vadd.f32 %v1795_v54, %v1722_v50  ;;  %v1889_v58 = vpop.f32.mrf.mxu1 }
 0x15f   : > { %1862 = vmatmul.f32.gmra.mxu0 %v1311_v52  ;;  %2010 = vmatmul.f32.gmra.mxu2 %v1313_v53  ;;  %v1890_v63 = vadd.f32 %v1889_v58, %v1816_v55 }
 0x161   : > { %1936 = vmatmul.f32.gmra.mxu1 %v1312_v59 }
 0x162   : > { %2708 = vmatmul.msk.f32.gmra.mxu3 %vm1178_vm0, %v1314_v62  ;;  %v1963_v0 = vpop.f32.mrf.mxu2 }
 0x163   : > { %v1964_v1 = vadd.f32 %v1963_v0, %v1890_v63 }
 0x164   : > { %v1818_v2 = vpop.f32.mrf.mxu0 }
 0x165   : > { %v1819_v13 = vadd.f32 %v1818_v2, %v3230_v25  ;;  %v2037_v6 = vpop.f32.mrf.mxu3 }
 0x166   : > { %v3380_v8 = vadd.f32 %v2037_v6, %v1964_v1  ;;  %v1892_v9 = vpop.f32.mrf.mxu1 }
 0x167   : > { %1865 = vmatmul.f32.gmra.mxu0 %v1319_v3  ;;  %2013 = vmatmul.f32.gmra.mxu2 %v1321_v4  ;;  %v1893_v14 = vadd.f32 %v1892_v9, %v1819_v13 }
 0x168   : > { %v2152_v15 = vsel %vm2151_vm1, %v3380_v8, 0.0 }
 0x169   : > { %1939 = vmatmul.f32.gmra.mxu1 %v1320_v11  ;;  %2171 = vadd.xlane.f32.xlu0 %v2152_v15 }
 0x16a   : > { %2709 = vmatmul.msk.f32.gmra.mxu3 %vm1178_vm0, %v1322_v12  ;;  %v1966_v25 = vpop.f32.mrf.mxu2 }
 0x16b   : > { %v1967_v16 = vadd.f32 %v1966_v25, %v1893_v14 }
 0x16c   : > { %v1821_v17 = vpop.f32.mrf.mxu0 }
 0x16d   : > { %v1822_v22 = vadd.f32 %v1821_v17, %v3241_v38  ;;  %v2040_v23 = vpop.f32.mrf.mxu3 }
 0x16e   : > { %v3393_v26 = vadd.f32 %v2040_v23, %v1967_v16  ;;  %v1895_v27 = vpop.f32.mrf.mxu1 }
 0x16f   : > { %1868 = vmatmul.f32.gmra.mxu0 %v1327_v20  ;;  %2016 = vmatmul.f32.gmra.mxu2 %v1329_v21  ;;  %v1896_v31 = vadd.f32 %v1895_v27, %v1822_v22 }
 0x170   : > { %v2153_v36 = vsel %vm2151_vm1, %v3393_v26, 0.0 }
 0x171   : > { %1942 = vmatmul.f32.gmra.mxu1 %v1328_v28  ;;  %2173 = vadd.xlane.f32.xlu0 %v2153_v36 }
 0x172   : > { %2710 = vmatmul.msk.f32.gmra.mxu3 %vm1178_vm0, %v1330_v30  ;;  %v1969_v35 = vpop.f32.mrf.mxu2 }
 0x173   : > { %v1970_v37 = vadd.f32 %v1969_v35, %v1896_v31 }
 0x174   : > { %v1824_v38 = vpop.f32.mrf.mxu0 }
 0x175   : > { %v1825_v39 = vadd.f32 %v1824_v38, %v3250_v49  ;;  %v2043_v40 = vpop.f32.mrf.mxu3 }
 0x176   : > { %v3403_v42 = vadd.f32 %v2043_v40, %v1970_v37  ;;  %v1898_v43 = vpop.f32.mrf.mxu1 }
 0x177   : > { %v1899_v44 = vadd.f32 %v1898_v43, %v1825_v39 }
 0x178   : > { %v2154_v33 = vsel %vm2151_vm1, %v3403_v42, 0.0 }
 0x179   : > { %2175 = vadd.xlane.f32.xlu1 %v2154_v33 }
 0x17a   : > { %v1972_v46 = vpop.f32.mrf.mxu2 }
 0x17b   : > { %v1973_v48 = vadd.f32 %v1972_v46, %v1899_v44 }
 0x17c   : > { %v1827_v50 = vpop.f32.mrf.mxu0 }
 0x17d   : > { %v1828_v51 = vadd.f32 %v1827_v50, %v3258_v60  ;;  %v2046_v52 = vpop.f32.mrf.mxu3 }
 0x17e   : > { %v3409_v53 = vadd.f32 %v2046_v52, %v1973_v48  ;;  %v1901_v54 = vpop.f32.mrf.mxu1 }
 0x17f   : > { %v1902_v49 = vadd.f32 %v1901_v54, %v1828_v51 }
 0x180   : > { %v2155_v58 = vsel %vm2151_vm1, %v3409_v53, 0.0 }
 0x181   : > { %2177 = vadd.xlane.f32.xlu1 %v2155_v58 }
 0x182   : > { %v1975_v55 = vpop.f32.mrf.mxu2 }
 0x183   : > { %v1976_v59 = vadd.f32 %v1975_v55, %v1902_v49 }
 0x184   : > { %v1830_v62 = vpop.f32.mrf.mxu0 }
 0x185   : > { %v1831_v63 = vadd.f32 %v1830_v62, %v3266_v7  ;;  %v2049_v0 = vpop.f32.mrf.mxu3 }
 0x186   : > { %v3415_v1 = vadd.f32 %v2049_v0, %v1976_v59  ;;  %v1904_v2 = vpop.f32.mrf.mxu1 }
 0x187   : > { %v1905_v60 = vadd.f32 %v1904_v2, %v1831_v63 }
 0x188   : > { %v2156_v4 = vsel %vm2151_vm1, %v3415_v1, 0.0 }
 0x189   : > { %2179 = vadd.xlane.f32.xlu2 %v2156_v4 }
 0x18a   : > { %v1978_v3 = vpop.f32.mrf.mxu2 }
 0x18b   : > { %v1979_v13 = vadd.f32 %v1978_v3, %v1905_v60 }
 0x18c   : > { %v1833_v6 = vpop.f32.mrf.mxu0 }
 0x18d   : > { %v1834_v9 = vadd.f32 %v1833_v6, %v3274_v19  ;;  %v2052_v11 = vpop.f32.mrf.mxu3 }
 0x18e   : > { %v3421_v12 = vadd.f32 %v2052_v11, %v1979_v13  ;;  %v1907_v14 = vpop.f32.mrf.mxu1 }
 0x18f   : > { %v1908_v7 = vadd.f32 %v1907_v14, %v1834_v9 }
 0x190   : > { %v2157_v15 = vsel %vm2151_vm1, %v3421_v12, 0.0 }
 0x191   : > { %2181 = vadd.xlane.f32.xlu2 %v2157_v15 }
 0x192   : > { %v1981_v25 = vpop.f32.mrf.mxu2 }
 0x193   : > { %v1982_v16 = vadd.f32 %v1981_v25, %v1908_v7 }
 0x194   : > { %v1836_v17 = vpop.f32.mrf.mxu0 }
 0x195   : > { %v1837_v20 = vadd.f32 %v1836_v17, %v3282_v32  ;;  %v2055_v21 = vpop.f32.mrf.mxu3 }
 0x196   : > { %v3427_v22 = vadd.f32 %v2055_v21, %v1982_v16  ;;  %v1910_v23 = vpop.f32.mrf.mxu1 }
 0x197   : > { %v1911_v19 = vadd.f32 %v1910_v23, %v1837_v20 }
 0x198   : > { %v2158_v28 = vsel %vm2151_vm1, %v3427_v22, 0.0 }
 0x199   : > { %2183 = vadd.xlane.f32.xlu0 %v2158_v28 }
 0x19a   : > { %v1984_v27 = vpop.f32.mrf.mxu2 }
 0x19b   : > { %v1985_v30 = vadd.f32 %v1984_v27, %v1911_v19 }
 0x19c   : > { %v1839_v31 = vpop.f32.mrf.mxu0 }
 0x19d   : > { %v1840_v35 = vadd.f32 %v1839_v31, %v3290_v45  ;;  %v2058_v36 = vpop.f32.mrf.mxu3 }
 0x19e   : > { %v3433_v37 = vadd.f32 %v2058_v36, %v1985_v30  ;;  %v1913_v38 = vpop.f32.mrf.mxu1 }
 0x19f   : > { %v1914_v32 = vadd.f32 %v1913_v38, %v1840_v35 }
 0x1a0   : > { %v2159_v40 = vsel %vm2151_vm1, %v3433_v37, 0.0 }
 0x1a1   : > { %2185 = vadd.xlane.f32.xlu1 %v2159_v40 }
 0x1a2   : > { %v1987_v39 = vpop.f32.mrf.mxu2 }
 0x1a3   : > { %v1988_v43 = vadd.f32 %v1987_v39, %v1914_v32 }
 0x1a4   : > { %v1842_v44 = vpop.f32.mrf.mxu0 }
 0x1a5   : > { %v1843_v46 = vadd.f32 %v1842_v44, %v3298_v57  ;;  %v2061_v33 = vpop.f32.mrf.mxu3 }
 0x1a6   : > { %v3439_v48 = vadd.f32 %v2061_v33, %v1988_v43  ;;  %v1916_v50 = vpop.f32.mrf.mxu1 }
 0x1a7   : > { %v1917_v45 = vadd.f32 %v1916_v50, %v1843_v46 }
 0x1a8   : > { %v2160_v52 = vsel %vm2151_vm1, %v3439_v48, 0.0 }
 0x1a9   : > { %2187 = vadd.xlane.f32.xlu2 %v2160_v52 }
 0x1aa   : > { %v1990_v51 = vpop.f32.mrf.mxu2 }
 0x1ab   : > { %v1991_v54 = vadd.f32 %v1990_v51, %v1917_v45 }
 0x1ac   : > { %v1845_v49 = vpop.f32.mrf.mxu0 }
 0x1ad   : > { %v1846_v55 = vadd.f32 %v1845_v49, %v3306_v5  ;;  %v2064_v58 = vpop.f32.mrf.mxu3 }
 0x1ae   : > { %v3445_v59 = vadd.f32 %v2064_v58, %v1991_v54  ;;  %v1919_v62 = vpop.f32.mrf.mxu1 }
 0x1af   : > { %v1920_v57 = vadd.f32 %v1919_v62, %v1846_v55 }
 0x1b0   : > { %v2161_v0 = vsel %vm2151_vm1, %v3445_v59, 0.0 }
 0x1b1   : > { %2189 = vadd.xlane.f32.xlu0 %v2161_v0 }
 0x1b2   : > { %v1993_v63 = vpop.f32.mrf.mxu2 }
 0x1b3   : > { %v1994_v2 = vadd.f32 %v1993_v63, %v1920_v57 }
 0x1b4   : > { %v1848_v60 = vpop.f32.mrf.mxu0 }
 0x1b5   : > { %v1849_v3 = vadd.f32 %v1848_v60, %v3314_v18  ;;  %v2067_v4 = vpop.f32.mrf.mxu3 }
 0x1b6   : > { %v3451_v13 = vadd.f32 %v2067_v4, %v1994_v2  ;;  %v1922_v6 = vpop.f32.mrf.mxu1 }
 0x1b7   : > { %v1923_v5 = vadd.f32 %v1922_v6, %v1849_v3 }
 0x1b8   : > { %v2162_v11 = vsel %vm2151_vm1, %v3451_v13, 0.0 }
 0x1b9   : > { %2191 = vadd.xlane.f32.xlu1 %v2162_v11 }
 0x1ba   : > { %v1996_v9 = vpop.f32.mrf.mxu2 }
 0x1bb   : > { %v1997_v14 = vadd.f32 %v1996_v9, %v1923_v5 }
 0x1bc   : > { %v1851_v7 = vpop.f32.mrf.mxu0 }
 0x1bd   : > { %v1852_v25 = vadd.f32 %v1851_v7, %v3322_v34  ;;  %v2070_v15 = vpop.f32.mrf.mxu3 }
 0x1be   : > { %v3457_v16 = vadd.f32 %v2070_v15, %v1997_v14  ;;  %v1925_v17 = vpop.f32.mrf.mxu1 }
 0x1bf   : > { %v1926_v18 = vadd.f32 %v1925_v17, %v1852_v25 }
 0x1c0   : > { %v2163_v21 = vsel %vm2151_vm1, %v3457_v16, 0.0 }
 0x1c1   : > { %2193 = vadd.xlane.f32.xlu2 %v2163_v21 }
 0x1c2   : > { %v1999_v20 = vpop.f32.mrf.mxu2 }
 0x1c3   : > { %v2000_v23 = vadd.f32 %v1999_v20, %v1926_v18 }
 0x1c4   : > { %v1854_v19 = vpop.f32.mrf.mxu0 }
 0x1c5   : > { %v1855_v27 = vadd.f32 %v1854_v19, %v3330_v47  ;;  %v2073_v28 = vpop.f32.mrf.mxu3 }
 0x1c6   : > { %v3463_v30 = vadd.f32 %v2073_v28, %v2000_v23  ;;  %v1928_v31 = vpop.f32.mrf.mxu1 }
 0x1c7   : > { %v1929_v34 = vadd.f32 %v1928_v31, %v1855_v27 }
 0x1c8   : > { %v2164_v36 = vsel %vm2151_vm1, %v3463_v30, 0.0 }
 0x1c9   : > { %2195 = vadd.xlane.f32.xlu0 %v2164_v36 }
 0x1ca   : > { %v2002_v35 = vpop.f32.mrf.mxu2 }
 0x1cb   : > { %v2003_v38 = vadd.f32 %v2002_v35, %v1929_v34 }
 0x1cc   : > { %v1857_v32 = vpop.f32.mrf.mxu0 }
 0x1cd   : > { %v1858_v39 = vadd.f32 %v1857_v32, %v3338_v61  ;;  %v2076_v40 = vpop.f32.mrf.mxu3 }
 0x1ce   : > { %v3469_v43 = vadd.f32 %v2076_v40, %v2003_v38  ;;  %v1931_v44 = vpop.f32.mrf.mxu1 }
 0x1cf   : > { %v1932_v47 = vadd.f32 %v1931_v44, %v1858_v39 }
 0x1d0   : > { %v2165_v33 = vsel %vm2151_vm1, %v3469_v43, 0.0 }
 0x1d1   : > { %2197 = vadd.xlane.f32.xlu1 %v2165_v33 }
 0x1d2   : > { %v2005_v46 = vpop.f32.mrf.mxu2 }
 0x1d3   : > { %v2006_v50 = vadd.f32 %v2005_v46, %v1932_v47 }
 0x1d4   : > { %v1860_v45 = vpop.f32.mrf.mxu0 }
 0x1d5   : > { %v1861_v51 = vadd.f32 %v1860_v45, %v3346_v10  ;;  %v2079_v52 = vpop.f32.mrf.mxu3 }
 0x1d6   : > { %v3475_v54 = vadd.f32 %v2079_v52, %v2006_v50  ;;  %v1934_v49 = vpop.f32.mrf.mxu1 }
 0x1d7   : > { %v1935_v61 = vadd.f32 %v1934_v49, %v1861_v51  ;;  %v2213_v49 = vsel %vm2209_vm2, %v3409_v53, 0.0 }
 0x1d8   : > { %v2166_v58 = vsel %vm2151_vm1, %v3475_v54, 0.0 }
 0x1d9   : > { %2199 = vadd.xlane.f32.xlu2 %v2166_v58 }
 0x1da   : > { %v2008_v55 = vpop.f32.mrf.mxu2 }
 0x1db   : > { %v2009_v62 = vadd.f32 %v2008_v55, %v1935_v61 }
 0x1dc   : > { %v1863_v57 = vpop.f32.mrf.mxu0  ;;  %v2172_v10 = vpop.xlane.xlu0 %2171 }
 0x1dd   : > { %v1864_v63 = vadd.f32 %v1863_v57, %v3354_v24  ;;  %v2082_v0 = vpop.f32.mrf.mxu3  ;;  %2801 = vrcp.f32 %v2172_v10 }
 0x1de   : > { %v3481_v2 = vadd.f32 %v2082_v0, %v2009_v62  ;;  %v1937_v60 = vpop.f32.mrf.mxu1 }
 0x1df   : > { %v1938_v3 = vadd.f32 %v1937_v60, %v1864_v63  ;;  %v2214_v63 = vsel %vm2209_vm2, %v3415_v1, 0.0 }
 0x1e0   : > { %v2167_v6 = vsel %vm2151_vm1, %v3481_v2, 0.0 }
 0x1e1   : > { %2201 = vadd.xlane.f32.xlu0 %v2167_v6 }
 0x1e2   : > { %v2011_v4 = vpop.f32.mrf.mxu2 }
 0x1e3   : > { %v2012_v5 = vadd.f32 %v2011_v4, %v1938_v3  ;;  %v2802_v17 = vpop.eup %2801  ;;  %v2215_v3 = vsel %vm2209_vm2, %v3421_v12, 0.0 }
 0x1e4   : > { %v1866_v9 = vpop.f32.mrf.mxu0  ;;  %v2174_v15 = vpop.xlane.xlu0 %2173 }
 0x1e5   : > { %v1867_v11 = vadd.f32 %v1866_v9, %v3362_v41  ;;  %v2085_v14 = vpop.f32.mrf.mxu3  ;;  %v2210_v41 = vsel %vm2209_vm2, %v3380_v8, 0.0  ;;  %2803 = vrcp.f32 %v2174_v15  ;;  %v2216_v9 = vsel %vm2209_vm2, %v3427_v22, 0.0 }
 0x1e6   : > { %v3487_v7 = vadd.f32 %v2085_v14, %v2012_v5  ;;  %v1940_v24 = vpop.f32.mrf.mxu1  ;;  %v3497_v28 = vmul.f32 %v2802_v17, %v2210_v41 }
 0x1e7   : > { %v1941_v25 = vadd.f32 %v1940_v24, %v1867_v11 }
 0x1e8   : > { %v2168_v20 = vsel %vm2151_vm1, %v3487_v7, 0.0  ;;  %v2267_v38 = vmul.f32 %v3497_v28, %v3497_v28 }
 0x1e9   : > { %2203 = vadd.xlane.f32.xlu1 %v2168_v20  ;;  %v2218_v20 = vsel %vm2209_vm2, %v3439_v48, 0.0 }
 0x1ea   : > { %v2014_v18 = vpop.f32.mrf.mxu2 }
 0x1eb   : > { %v2015_v21 = vadd.f32 %v2014_v18, %v1941_v25  ;;  %v2804_v32 = vpop.eup %2803  ;;  %v2217_v25 = vsel %vm2209_vm2, %v3433_v37, 0.0 }
 0x1ec   : > { %v1869_v23 = vpop.f32.mrf.mxu0  ;;  %v2176_v35 = vpop.xlane.xlu1 %2175 }
 0x1ed   : > { %v1870_v19 = vadd.f32 %v1869_v23, %v3371_v56  ;;  %v2088_v27 = vpop.f32.mrf.mxu3  ;;  %2805 = vrcp.f32 %v2176_v35  ;;  %v2211_v56 = vsel %vm2209_vm2, %v3393_v26, 0.0  ;;  %v2212_v26 = vsel %vm2209_vm2, %v3403_v42, 0.0 }
 0x1ee   : > { %v3499_v31 = vadd.f32 %v2088_v27, %v2015_v21  ;;  %v1943_v34 = vpop.f32.mrf.mxu1  ;;  %v3509_v47 = vmul.f32 %v2804_v32, %v2211_v56 }
 0x1ef   : > { %v1944_v36 = vadd.f32 %v1943_v34, %v1870_v19  ;;  %v2219_v19 = vsel %vm2209_vm2, %v3445_v59, 0.0 }
 0x1f0   : > { %v2169_v8 = vsel %vm2151_vm1, %v3499_v31, 0.0  ;;  %v2268_v50 = vmul.f32 %v3509_v47, %v3509_v47 }
 0x1f1   : > { %2205 = vadd.xlane.f32.xlu2 %v2169_v8  ;;  %2286 = vadd.xlane.f32.xlu1 %v2267_v38  ;;  %v2221_v8 = vsel %vm2209_vm2, %v3457_v16, 0.0 }
 0x1f2   : > { %v2017_v39 = vpop.f32.mrf.mxu2 }
 0x1f3   : > { %v2018_v40 = vadd.f32 %v2017_v39, %v1944_v36  ;;  %v2806_v45 = vpop.eup %2805  ;;  %v2220_v36 = vsel %vm2209_vm2, %v3451_v13, 0.0 }
 0x1f4   : > { %v2178_v33 = vpop.xlane.xlu1 %2177  ;;  %v3524_v61 = vmul.f32 %v2806_v45, %v2212_v26  ;;  %v2223_v26 = vsel %vm2209_vm2, %v3469_v43, 0.0 }
 0x1f5   : > { %v2091_v44 = vpop.f32.mrf.mxu3  ;;  %2807 = vrcp.f32 %v2178_v33  ;;  %v2222_v33 = vsel %vm2209_vm2, %v3463_v30, 0.0 }
 0x1f6   : > { %v3511_v46 = vadd.f32 %v2091_v44, %v2018_v40  ;;  %v2269_v57 = vmul.f32 %v3524_v61, %v3524_v61 }
 0x1f8   : > { %v2170_v51 = vsel %vm2151_vm1, %v3511_v46, 0.0 }
 0x1f9   : > { %2207 = vadd.xlane.f32.xlu0 %v2170_v51  ;;  %2288 = vadd.xlane.f32.xlu2 %v2268_v50 }
 0x1fb   : > { %v2808_v52 = vpop.eup %2807 }
 0x1fc   : > { %v2180_v55 = vpop.xlane.xlu2 %2179  ;;  %v3526_v58 = vmul.f32 %v2808_v52, %v2213_v49 }
 0x1fd   : > { %2809 = vrcp.f32 %v2180_v55 }
 0x1fe   : > { %v2270_v62 = vmul.f32 %v3526_v58, %v3526_v58 }
 0x200   : > { %2292 = vadd.xlane.f32.xlu1 %v2270_v62  ;;  %v2224_v62 = vsel %vm2209_vm2, %v3475_v54, 0.0 }
 0x201   : > { %2290 = vadd.xlane.f32.xlu0 %v2269_v57 }
 0x203   : > { %v2810_v42 = vpop.eup %2809 }
 0x204   : > { %v2182_v53 = vpop.xlane.xlu2 %2181  ;;  %v3535_v0 = vmul.f32 %v2810_v42, %v2214_v63 }
 0x205   : > { %2811 = vrcp.f32 %v2182_v53  ;;  %v2225_v53 = vsel %vm2209_vm2, %v3481_v2, 0.0 }
 0x206   : > { %v2271_v60 = vmul.f32 %v3535_v0, %v3535_v0 }
 0x208   : > { %2294 = vadd.xlane.f32.xlu2 %v2271_v60 }
 0x20b   : > { %v2812_v10 = vpop.eup %2811 }
 0x20c   : > { %v2184_v4 = vpop.xlane.xlu0 %2183  ;;  %v3542_v6 = vmul.f32 %v2812_v10, %v2215_v3 }
 0x20d   : > { %2813 = vrcp.f32 %v2184_v4  ;;  %v2226_v4 = vsel %vm2209_vm2, %v3487_v7, 0.0 }
 0x20e   : > { %v2272_v1 = vmul.f32 %v3542_v6, %v3542_v6 }
 0x210   : > { %2296 = vadd.xlane.f32.xlu0 %v2272_v1 }
 0x213   : > { %v2814_v5 = vpop.eup %2813 }
 0x214   : > { %v2186_v11 = vpop.xlane.xlu1 %2185  ;;  %v3549_v14 = vmul.f32 %v2814_v5, %v2216_v9 }
 0x215   : > { %2815 = vrcp.f32 %v2186_v11 }
 0x216   : > { %v2273_v12 = vmul.f32 %v3549_v14, %v3549_v14 }
 0x218   : > { %2298 = vadd.xlane.f32.xlu1 %v2273_v12 }
 0x21b   : > { %v2816_v24 = vpop.eup %2815 }
 0x21c   : > { %v2188_v15 = vpop.xlane.xlu2 %2187  ;;  %v3556_v17 = vmul.f32 %v2816_v24, %v2217_v25  ;;  %v2227_v24 = vsel %vm2209_vm2, %v3499_v31, 0.0  ;;  %v2228_v31 = vsel %vm2209_vm2, %v3511_v46, 0.0 }
 0x21d   : > { %2817 = vrcp.f32 %v2188_v15 }
 0x21e   : > { %v2274_v22 = vmul.f32 %v3556_v17, %v3556_v17 }
 0x220   : > { %2300 = vadd.xlane.f32.xlu2 %v2274_v22 }
 0x223   : > { %v2818_v18 = vpop.eup %2817 }
 0x224   : > { %v2190_v21 = vpop.xlane.xlu0 %2189  ;;  %v3563_v41 = vmul.f32 %v2818_v18, %v2218_v20 }
 0x225   : > { %2819 = vrcp.f32 %v2190_v21 }
 0x226   : > { %v2275_v37 = vmul.f32 %v3563_v41, %v3563_v41 }
 0x228   : > { %2302 = vadd.xlane.f32.xlu0 %v2275_v37 }
 0x22b   : > { %v2820_v23 = vpop.eup %2819 }
 0x22c   : > { %v2192_v27 = vpop.xlane.xlu1 %2191  ;;  %v3570_v34 = vmul.f32 %v2820_v23, %v2219_v19 }
 0x22d   : > { %2821 = vrcp.f32 %v2192_v27 }
 0x22e   : > { %v2276_v48 = vmul.f32 %v3570_v34, %v3570_v34 }
 0x230   : > { %2304 = vadd.xlane.f32.xlu1 %v2276_v48 }
 0x233   : > { %v2822_v35 = vpop.eup %2821 }
 0x234   : > { %v2194_v38 = vpop.xlane.xlu2 %2193  ;;  %v3577_v32 = vmul.f32 %v2822_v35, %v2220_v36 }
 0x235   : > { %2823 = vrcp.f32 %v2194_v38 }
 0x236   : > { %v2277_v59 = vmul.f32 %v3577_v32, %v3577_v32 }
 0x238   : > { %2306 = vadd.xlane.f32.xlu2 %v2277_v59 }
 0x23b   : > { %v2824_v39 = vpop.eup %2823 }
 0x23c   : > { %v2196_v40 = vpop.xlane.xlu0 %2195  ;;  %v3584_v56 = vmul.f32 %v2824_v39, %v2221_v8 }
 0x23d   : > { %2825 = vrcp.f32 %v2196_v40 }
 0x23e   : > { %v2278_v13 = vmul.f32 %v3584_v56, %v3584_v56 }
 0x240   : > { %2308 = vadd.xlane.f32.xlu0 %v2278_v13 }
 0x243   : > { %v2826_v44 = vpop.eup %2825 }
 0x244   : > { %v2198_v50 = vpop.xlane.xlu1 %2197  ;;  %v3591_v45 = vmul.f32 %v2826_v44, %v2222_v33 }
 0x245   : > { %2827 = vrcp.f32 %v2198_v50 }
 0x246   : > { %v2279_v16 = vmul.f32 %v3591_v45, %v3591_v45 }
 0x248   : > { %2310 = vadd.xlane.f32.xlu1 %v2279_v16 }
 0x24b   : > { %v2828_v51 = vpop.eup %2827 }
 0x24c   : > { %v2200_v52 = vpop.xlane.xlu2 %2199  ;;  %v3598_v49 = vmul.f32 %v2828_v51, %v2223_v26 }
 0x24d   : > { %2829 = vrcp.f32 %v2200_v52 }
 0x24e   : > { %v2280_v30 = vmul.f32 %v3598_v49, %v3598_v49 }
 0x250   : > { %2312 = vadd.xlane.f32.xlu2 %v2280_v30 }
 0x253   : > { %v2830_v55 = vpop.eup %2829 }
 0x254   : > { %v2202_v57 = vpop.xlane.xlu0 %2201  ;;  %v3605_v42 = vmul.f32 %v2830_v55, %v2224_v62 }
 0x255   : > { %2831 = vrcp.f32 %v2202_v57 }
 0x256   : > { %v2281_v43 = vmul.f32 %v3605_v42, %v3605_v42 }
 0x258   : > { %2314 = vadd.xlane.f32.xlu0 %v2281_v43 }
 0x25b   : > { %v2832_v63 = vpop.eup %2831 }
 0x25c   : > { %v2204_v60 = vpop.xlane.xlu1 %2203  ;;  %v3612_v10 = vmul.f32 %v2832_v63, %v2225_v53 }
 0x25d   : > { %2833 = vrcp.f32 %v2204_v60 }
 0x25e   : > { %v2282_v54 = vmul.f32 %v3612_v10, %v3612_v10 }
 0x260   : > { %2316 = vadd.xlane.f32.xlu1 %v2282_v54 }
 0x263   : > { %v2834_v3 = vpop.eup %2833 }
 0x264   : > { %v2206_v1 = vpop.xlane.xlu2 %2205  ;;  %v2287_v5 = vpop.xlane.xlu1 %2286  ;;  %v3619_v9 = vmul.f32 %v2834_v3, %v2226_v4 }
 0x265   : > { %2835 = vrcp.f32 %v2206_v1  ;;  %v2324_v11 = vmax.f32 %v2287_v5, 1e-24 }
 0x266   : > { %v2283_v2 = vmul.f32 %v3619_v9, %v3619_v9 }
 0x267   : > { %2837 = vrsqrt.f32 %v2324_v11  ;;  %vm2349_vm4 = vweird.f32 %v2324_v11 }
 0x268   : > { %2318 = vadd.xlane.f32.xlu2 %v2283_v2 }
 0x26b   : > { %v2836_v12 = vpop.eup %2835 }
 0x26c   : > { %v2289_v25 = vpop.xlane.xlu2 %2288  ;;  %v2208_v15 = vpop.xlane.xlu0 %2207  ;;  %v3626_v7 = vmul.f32 %v2836_v12, %v2227_v24 }
 0x26d   : > { %v2838_v22 = vpop.eup %2837  ;;  %v2325_v18 = vmax.f32 %v2289_v25, 1e-24  ;;  %2839 = vrcp.f32 %v2208_v15 }
 0x26e   : > { %v2344_v20 = vmul.f32 %v2838_v22, %v2324_v11  ;;  %v2284_v21 = vmul.f32 %v3626_v7, %v3626_v7  ;;  %vm2350_vm3 = vweird.f32 %v2838_v22 }
 0x26f   : > { %2841 = vrsqrt.f32 %v2325_v18  ;;  %vm2351_vm5 = vmor %vm2349_vm4, %vm2350_vm3  ;;  %vm2359_vm7 = vweird.f32 %v2325_v18 }
 0x270   : > { %v2345_v37 = vmul.f32 %v2838_v22, %v2344_v20  ;;  %2320 = vadd.xlane.f32.xlu0 %v2284_v21 }
 0x272   : > { %v2346_v23 = vmul.f32 0.5, %v2345_v37 }
 0x273   : > { %v2840_v19 = vpop.eup %2839  ;;  %v2293_v27 = vpop.xlane.xlu1 %2292 }
 0x274   : > { %v2347_v48 = vsub.f32 1.5, %v2346_v23  ;;  %v2327_v35 = vmax.f32 %v2293_v27, 1e-24  ;;  %v2291_v36 = vpop.xlane.xlu0 %2290  ;;  %v3634_v38 = vmul.f32 %v2840_v19, %v2228_v31 }
 0x275   : > { %v2842_v59 = vpop.eup %2841  ;;  %v2326_v39 = vmax.f32 %v2291_v36, 1e-24 }
 0x276   : > { %v2348_v8 = vmul.f32 %v2838_v22, %v2347_v48  ;;  %v2354_v40 = vmul.f32 %v2842_v59, %v2325_v18  ;;  %2843 = vrsqrt.f32 %v2327_v35  ;;  %v2285_v13 = vmul.f32 %v3634_v38, %v3634_v38 }
 0x277   : > { %2845 = vrsqrt.f32 %v2326_v39  ;;  %vm2360_vm6 = vweird.f32 %v2842_v59  ;;  %vm2379_vm11 = vweird.f32 %v2327_v35  ;;  %vm2369_vm13 = vweird.f32 %v2326_v39 }
 0x278   : > { %v2352_v29 = vsel %vm2351_vm5, %v2838_v22, %v2348_v8  ;;  %v2355_v46 = vmul.f32 %v2842_v59, %v2354_v40  ;;  %2322 = vadd.xlane.f32.xlu1 %v2285_v13  ;;  %vm2361_vm8 = vmor %vm2359_vm7, %vm2360_vm6 }
 0x279   : > { %v2533_v44 = vmul.f32 %v2352_v29, %v3497_v28 }
 0x27a   : > { %v2356_v33 = vmul.f32 0.5, %v2355_v46 }
 0x27b   : > { %2552 = vst [vmem:[%s3639_s19] sm:$0xff] %v2533_v44  ;;  %v2295_v50 = vpop.xlane.xlu2 %2294 }
 0x27c   : > { %v2844_v16 = vpop.eup %2843  ;;  %v2357_v51 = vsub.f32 1.5, %v2356_v33  ;;  %v2328_v26 = vmax.f32 %v2295_v50, 1e-24 }
 0x27d   : > { %v2846_v52 = vpop.eup %2845  ;;  %v2374_v30 = vmul.f32 %v2844_v16, %v2327_v35  ;;  %vm2380_vm9 = vweird.f32 %v2844_v16 }
 0x27e   : > { %v2358_v55 = vmul.f32 %v2842_v59, %v2357_v51  ;;  %v2364_v62 = vmul.f32 %v2846_v52, %v2326_v39  ;;  %2847 = vrsqrt.f32 %v2328_v26  ;;  %vm2370_vm10 = vweird.f32 %v2846_v52  ;;  %vm2381_vm12 = vmor %vm2379_vm11, %vm2380_vm9 }
 0x27f   : > { %v2375_v28 = vmul.f32 %v2844_v16, %v2374_v30  ;;  %vm2371_vm14 = vmor %vm2369_vm13, %vm2370_vm10  ;;  %vm2389_vm0 = vweird.f32 %v2328_v26 }
 0x280   : > { %v2362_v57 = vsel %vm2361_vm8, %v2842_v59, %v2358_v55  ;;  %v2365_v43 = vmul.f32 %v2846_v52, %v2364_v62 }
 0x281   : > { %v2534_v63 = vmul.f32 %v2362_v57, %v3509_v47  ;;  %v2376_v53 = vmul.f32 0.5, %v2375_v28 }
 0x282   : > { %v2366_v60 = vmul.f32 0.5, %v2365_v43 }
 0x283   : > { %2553 = vst [vmem:[%s3639_s19 + $0x8] sm:$0xff] %v2534_v63  ;;  %v2377_v54 = vsub.f32 1.5, %v2376_v53  ;;  %v2297_v3 = vpop.xlane.xlu0 %2296 }
 0x284   : > { %v2848_v4 = vpop.eup %2847  ;;  %v2367_v1 = vsub.f32 1.5, %v2366_v60  ;;  %v2329_v5 = vmax.f32 %v2297_v3, 1e-24 }
 0x285   : > { %v2378_v11 = vmul.f32 %v2844_v16, %v2377_v54  ;;  %v2384_v2 = vmul.f32 %v2848_v4, %v2328_v26  ;;  %vm2390_vm15 = vweird.f32 %v2848_v4 }
 0x286   : > { %v2368_v12 = vmul.f32 %v2846_v52, %v2367_v1  ;;  %2849 = vrsqrt.f32 %v2329_v5  ;;  %vm2391_vm1 = vmor %vm2389_vm0, %vm2390_vm15  ;;  %vm2399_vm3 = vweird.f32 %v2329_v5 }
 0x287   : > { %v2382_v47 = vsel %vm2381_vm12, %v2844_v16, %v2378_v11  ;;  %v2385_v24 = vmul.f32 %v2848_v4, %v2384_v2 }
 0x288   : > { %v2536_v25 = vmul.f32 %v2382_v47, %v3526_v58  ;;  %v2372_v15 = vsel %vm2371_vm14, %v2846_v52, %v2368_v12 }
 0x289   : > { %v2535_v22 = vmul.f32 %v2372_v15, %v3524_v61  ;;  %v2386_v18 = vmul.f32 0.5, %v2385_v24 }
 0x28a   : > { %2555 = vst [vmem:[%s3639_s19 + $0x18] sm:$0xff] %v2536_v25 }
 0x28b   : > { %2554 = vst [vmem:[%s3639_s19 + $0x10] sm:$0xff] %v2535_v22  ;;  %v2387_v20 = vsub.f32 1.5, %v2386_v18  ;;  %v2299_v21 = vpop.xlane.xlu1 %2298 }
 0x28c   : > { %v2850_v37 = vpop.eup %2849  ;;  %v2330_v23 = vmax.f32 %v2299_v21, 1e-24 }
 0x28d   : > { %v2388_v19 = vmul.f32 %v2848_v4, %v2387_v20  ;;  %v2394_v27 = vmul.f32 %v2850_v37, %v2329_v5  ;;  %vm2400_vm2 = vweird.f32 %v2850_v37 }
 0x28e   : > { %2851 = vrsqrt.f32 %v2330_v23  ;;  %vm2401_vm4 = vmor %vm2399_vm3, %vm2400_vm2  ;;  %vm2409_vm6 = vweird.f32 %v2330_v23 }
 0x28f   : > { %v2392_v31 = vsel %vm2391_vm1, %v2848_v4, %v2388_v19  ;;  %v2395_v48 = vmul.f32 %v2850_v37, %v2394_v27 }
 0x290   : > { %v2537_v58 = vmul.f32 %v2392_v31, %v3535_v0 }
 0x291   : > { %v2396_v35 = vmul.f32 0.5, %v2395_v48 }
 0x292   : > { %2556 = vst [vmem:[%s3639_s19 + $0x20] sm:$0xff] %v2537_v58 }
 0x293   : > { %v2397_v61 = vsub.f32 1.5, %v2396_v35  ;;  %v2301_v36 = vpop.xlane.xlu2 %2300 }
 0x294   : > { %v2852_v59 = vpop.eup %2851  ;;  %v2331_v39 = vmax.f32 %v2301_v36, 1e-24 }
 0x295   : > { %v2398_v8 = vmul.f32 %v2850_v37, %v2397_v61  ;;  %v2404_v40 = vmul.f32 %v2852_v59, %v2330_v23  ;;  %vm2410_vm5 = vweird.f32 %v2852_v59 }
 0x296   : > { %2853 = vrsqrt.f32 %v2331_v39  ;;  %vm2411_vm7 = vmor %vm2409_vm6, %vm2410_vm5  ;;  %vm2419_vm9 = vweird.f32 %v2331_v39 }
 0x297   : > { %v2402_v13 = vsel %vm2401_vm4, %v2850_v37, %v2398_v8  ;;  %v2405_v29 = vmul.f32 %v2852_v59, %v2404_v40 }
 0x298   : > { %v2538_v46 = vmul.f32 %v2402_v13, %v3542_v6 }
 0x299   : > { %v2406_v44 = vmul.f32 0.5, %v2405_v29 }
 0x29a   : > { %2557 = vst [vmem:[%s3639_s19 + $0x28] sm:$0xff] %v2538_v46 }
 0x29b   : > { %v2407_v0 = vsub.f32 1.5, %v2406_v44  ;;  %v2303_v33 = vpop.xlane.xlu0 %2302 }
 0x29c   : > { %v2854_v50 = vpop.eup %2853  ;;  %v2332_v16 = vmax.f32 %v2303_v33, 1e-24 }
 0x29d   : > { %v2408_v51 = vmul.f32 %v2852_v59, %v2407_v0  ;;  %v2414_v26 = vmul.f32 %v2854_v50, %v2331_v39  ;;  %vm2420_vm8 = vweird.f32 %v2854_v50 }
 0x29e   : > { %2855 = vrsqrt.f32 %v2332_v16  ;;  %vm2421_vm10 = vmor %vm2419_vm9, %vm2420_vm8  ;;  %vm2429_vm12 = vweird.f32 %v2332_v16 }
 0x29f   : > { %v2412_v52 = vsel %vm2411_vm7, %v2852_v59, %v2408_v51  ;;  %v2415_v30 = vmul.f32 %v2854_v50, %v2414_v26 }
 0x2a0   : > { %v2539_v55 = vmul.f32 %v2412_v52, %v3549_v14 }
 0x2a1   : > { %v2416_v62 = vmul.f32 0.5, %v2415_v30 }
 0x2a2   : > { %2558 = vst [vmem:[%s3639_s19 + $0x30] sm:$0xff] %v2539_v55 }
 0x2a3   : > { %v2417_v6 = vsub.f32 1.5, %v2416_v62  ;;  %v2305_v28 = vpop.xlane.xlu1 %2304 }
 0x2a4   : > { %v2856_v57 = vpop.eup %2855  ;;  %v2333_v43 = vmax.f32 %v2305_v28, 1e-24 }
 0x2a5   : > { %v2418_v63 = vmul.f32 %v2854_v50, %v2417_v6  ;;  %v2424_v53 = vmul.f32 %v2856_v57, %v2332_v16  ;;  %vm2430_vm11 = vweird.f32 %v2856_v57 }
 0x2a6   : > { %2857 = vrsqrt.f32 %v2333_v43  ;;  %vm2431_vm13 = vmor %vm2429_vm12, %vm2430_vm11  ;;  %vm2439_vm15 = vweird.f32 %v2333_v43 }
 0x2a7   : > { %v2422_v60 = vsel %vm2421_vm10, %v2854_v50, %v2418_v63  ;;  %v2425_v54 = vmul.f32 %v2856_v57, %v2424_v53 }
 0x2a8   : > { %v2540_v3 = vmul.f32 %v2422_v60, %v3556_v17 }
 0x2a9   : > { %v2426_v4 = vmul.f32 0.5, %v2425_v54 }
 0x2aa   : > { %2559 = vst [vmem:[%s3639_s19 + $0x38] sm:$0xff] %v2540_v3 }
 0x2ab   : > { %v2427_v14 = vsub.f32 1.5, %v2426_v4  ;;  %v2307_v1 = vpop.xlane.xlu2 %2306 }
 0x2ac   : > { %v2858_v5 = vpop.eup %2857  ;;  %v2334_v11 = vmax.f32 %v2307_v1, 1e-24 }
 0x2ad   : > { %v2428_v2 = vmul.f32 %v2856_v57, %v2427_v14  ;;  %v2434_v12 = vmul.f32 %v2858_v5, %v2333_v43  ;;  %vm2440_vm14 = vweird.f32 %v2858_v5 }
 0x2ae   : > { %2859 = vrsqrt.f32 %v2334_v11  ;;  %vm2441_vm0 = vmor %vm2439_vm15, %vm2440_vm14  ;;  %vm2449_vm2 = vweird.f32 %v2334_v11 }
 0x2af   : > { %v2432_v47 = vsel %vm2431_vm13, %v2856_v57, %v2428_v2  ;;  %v2435_v24 = vmul.f32 %v2858_v5, %v2434_v12 }
 0x2b0   : > { %v2541_v25 = vmul.f32 %v2432_v47, %v3563_v41 }
 0x2b1   : > { %v2436_v15 = vmul.f32 0.5, %v2435_v24 }
 0x2b2   : > { %2560 = vst [vmem:[%s3639_s19 + $0x40] sm:$0xff] %v2541_v25 }
 0x2b3   : > { %v2437_v17 = vsub.f32 1.5, %v2436_v15  ;;  %v2309_v22 = vpop.xlane.xlu0 %2308 }
 0x2b4   : > { %v2860_v18 = vpop.eup %2859  ;;  %v2335_v20 = vmax.f32 %v2309_v22, 1e-24 }
 0x2b5   : > { %v2438_v21 = vmul.f32 %v2858_v5, %v2437_v17  ;;  %v2444_v37 = vmul.f32 %v2860_v18, %v2334_v11  ;;  %vm2450_vm1 = vweird.f32 %v2860_v18 }
 0x2b6   : > { %2861 = vrsqrt.f32 %v2335_v20  ;;  %vm2451_vm3 = vmor %vm2449_vm2, %vm2450_vm1  ;;  %vm2459_vm5 = vweird.f32 %v2335_v20 }
 0x2b7   : > { %v2442_v23 = vsel %vm2441_vm0, %v2858_v5, %v2438_v21  ;;  %v2445_v19 = vmul.f32 %v2860_v18, %v2444_v37 }
 0x2b8   : > { %v2542_v27 = vmul.f32 %v2442_v23, %v3570_v34 }
 0x2b9   : > { %v2446_v31 = vmul.f32 0.5, %v2445_v19 }
 0x2ba   : > { %2561 = vst [vmem:[%s3639_s19 + $0x48] sm:$0xff] %v2542_v27 }
 0x2bb   : > { %v2447_v41 = vsub.f32 1.5, %v2446_v31  ;;  %v2311_v48 = vpop.xlane.xlu1 %2310 }
 0x2bc   : > { %v2862_v58 = vpop.eup %2861  ;;  %v2336_v35 = vmax.f32 %v2311_v48, 1e-24 }
 0x2bd   : > { %v2448_v61 = vmul.f32 %v2860_v18, %v2447_v41  ;;  %v2454_v36 = vmul.f32 %v2862_v58, %v2335_v20  ;;  %vm2460_vm4 = vweird.f32 %v2862_v58 }
 0x2be   : > { %2863 = vrsqrt.f32 %v2336_v35  ;;  %vm2461_vm6 = vmor %vm2459_vm5, %vm2460_vm4  ;;  %vm2469_vm8 = vweird.f32 %v2336_v35 }
 0x2bf   : > { %v2452_v59 = vsel %vm2451_vm3, %v2860_v18, %v2448_v61  ;;  %v2455_v39 = vmul.f32 %v2862_v58, %v2454_v36 }
 0x2c0   : > { %v2543_v8 = vmul.f32 %v2452_v59, %v3577_v32 }
 0x2c1   : > { %v2456_v40 = vmul.f32 0.5, %v2455_v39 }
 0x2c2   : > { %2562 = vst [vmem:[%s3639_s19 + $0x50] sm:$0xff] %v2543_v8 }
 0x2c3   : > { %v2457_v34 = vsub.f32 1.5, %v2456_v40  ;;  %v2313_v13 = vpop.xlane.xlu2 %2312 }
 0x2c4   : > { %v2864_v29 = vpop.eup %2863  ;;  %v2337_v46 = vmax.f32 %v2313_v13, 1e-24 }
 0x2c5   : > { %v2458_v44 = vmul.f32 %v2862_v58, %v2457_v34  ;;  %v2464_v0 = vmul.f32 %v2864_v29, %v2336_v35  ;;  %vm2470_vm7 = vweird.f32 %v2864_v29 }
 0x2c6   : > { %2865 = vrsqrt.f32 %v2337_v46  ;;  %vm2471_vm9 = vmor %vm2469_vm8, %vm2470_vm7  ;;  %vm2479_vm11 = vweird.f32 %v2337_v46 }
 0x2c7   : > { %v2462_v33 = vsel %vm2461_vm6, %v2862_v58, %v2458_v44  ;;  %v2465_v50 = vmul.f32 %v2864_v29, %v2464_v0 }
 0x2c8   : > { %v2544_v16 = vmul.f32 %v2462_v33, %v3584_v56 }
 0x2c9   : > { %v2466_v51 = vmul.f32 0.5, %v2465_v50 }
 0x2ca   : > { %2563 = vst [vmem:[%s3639_s19 + $0x58] sm:$0xff] %v2544_v16 }
 0x2cb   : > { %v2467_v32 = vsub.f32 1.5, %v2466_v51  ;;  %v2315_v26 = vpop.xlane.xlu0 %2314 }
 0x2cc   : > { %v2866_v52 = vpop.eup %2865  ;;  %v2338_v30 = vmax.f32 %v2315_v26, 1e-24 }
 0x2cd   : > { %v2468_v55 = vmul.f32 %v2864_v29, %v2467_v32  ;;  %v2474_v62 = vmul.f32 %v2866_v52, %v2337_v46  ;;  %vm2480_vm10 = vweird.f32 %v2866_v52 }
 0x2ce   : > { %2867 = vrsqrt.f32 %v2338_v30  ;;  %vm2481_vm12 = vmor %vm2479_vm11, %vm2480_vm10  ;;  %vm2489_vm14 = vweird.f32 %v2338_v30 }
 0x2cf   : > { %v2472_v6 = vsel %vm2471_vm9, %v2864_v29, %v2468_v55  ;;  %v2475_v28 = vmul.f32 %v2866_v52, %v2474_v62 }
 0x2d0   : > { %v2545_v57 = vmul.f32 %v2472_v6, %v3591_v45 }
 0x2d1   : > { %v2476_v43 = vmul.f32 0.5, %v2475_v28 }
 0x2d2   : > { %2564 = vst [vmem:[%s3639_s19 + $0x60] sm:$0xff] %v2545_v57 }
 0x2d3   : > { %v2477_v56 = vsub.f32 1.5, %v2476_v43  ;;  %v2317_v63 = vpop.xlane.xlu1 %2316 }
 0x2d4   : > { %v2868_v53 = vpop.eup %2867  ;;  %v2339_v60 = vmax.f32 %v2317_v63, 1e-24 }
 0x2d5   : > { %v2478_v54 = vmul.f32 %v2866_v52, %v2477_v56  ;;  %v2484_v3 = vmul.f32 %v2868_v53, %v2338_v30  ;;  %vm2490_vm13 = vweird.f32 %v2868_v53 }
 0x2d6   : > { %2869 = vrsqrt.f32 %v2339_v60  ;;  %vm2491_vm15 = vmor %vm2489_vm14, %vm2490_vm13  ;;  %vm2499_vm1 = vweird.f32 %v2339_v60 }
 0x2d7   : > { %v2482_v4 = vsel %vm2481_vm12, %v2866_v52, %v2478_v54  ;;  %v2485_v14 = vmul.f32 %v2868_v53, %v2484_v3 }
 0x2d8   : > { %v2546_v1 = vmul.f32 %v2482_v4, %v3598_v49 }
 0x2d9   : > { %v2486_v5 = vmul.f32 0.5, %v2485_v14 }
 0x2da   : > { %2565 = vst [vmem:[%s3639_s19 + $0x68] sm:$0xff] %v2546_v1 }
 0x2db   : > { %v2487_v45 = vsub.f32 1.5, %v2486_v5  ;;  %v2319_v11 = vpop.xlane.xlu2 %2318 }
 0x2dc   : > { %v2870_v2 = vpop.eup %2869  ;;  %v2340_v12 = vmax.f32 %v2319_v11, 1e-24 }
 0x2dd   : > { %v2488_v47 = vmul.f32 %v2868_v53, %v2487_v45  ;;  %v2494_v24 = vmul.f32 %v2870_v2, %v2339_v60  ;;  %vm2500_vm0 = vweird.f32 %v2870_v2 }
 0x2de   : > { %2871 = vrsqrt.f32 %v2340_v12  ;;  %vm2501_vm2 = vmor %vm2499_vm1, %vm2500_vm0  ;;  %vm2509_vm4 = vweird.f32 %v2340_v12 }
 0x2df   : > { %v2492_v25 = vsel %vm2491_vm15, %v2868_v53, %v2488_v47  ;;  %v2495_v15 = vmul.f32 %v2870_v2, %v2494_v24 }
 0x2e0   : > { %v2547_v17 = vmul.f32 %v2492_v25, %v3605_v42 }
 0x2e1   : > { %v2496_v22 = vmul.f32 0.5, %v2495_v15 }
 0x2e2   : > { %2566 = vst [vmem:[%s3639_s19 + $0x70] sm:$0xff] %v2547_v17 }
 0x2e3   : > { %v2497_v49 = vsub.f32 1.5, %v2496_v22  ;;  %v2321_v18 = vpop.xlane.xlu0 %2320 }
 0x2e4   : > { %v2872_v20 = vpop.eup %2871  ;;  %v2341_v21 = vmax.f32 %v2321_v18, 1e-24 }
 0x2e5   : > { %v2498_v37 = vmul.f32 %v2870_v2, %v2497_v49  ;;  %v2504_v23 = vmul.f32 %v2872_v20, %v2340_v12  ;;  %vm2510_vm3 = vweird.f32 %v2872_v20 }
 0x2e6   : > { %2873 = vrsqrt.f32 %v2341_v21  ;;  %vm2511_vm5 = vmor %vm2509_vm4, %vm2510_vm3  ;;  %vm2519_vm7 = vweird.f32 %v2341_v21 }
 0x2e7   : > { %v2502_v19 = vsel %vm2501_vm2, %v2870_v2, %v2498_v37  ;;  %v2505_v27 = vmul.f32 %v2872_v20, %v2504_v23 }
 0x2e8   : > { %v2548_v31 = vmul.f32 %v2502_v19, %v3612_v10 }
 0x2e9   : > { %v2506_v41 = vmul.f32 0.5, %v2505_v27 }
 0x2ea   : > { %2567 = vst [vmem:[%s3639_s19 + $0x78] sm:$0xff] %v2548_v31 }
 0x2eb   : > { %v2507_v42 = vsub.f32 1.5, %v2506_v41  ;;  %v2323_v58 = vpop.xlane.xlu1 %2322 }
 0x2ec   : > { %v2874_v48 = vpop.eup %2873  ;;  %v2342_v36 = vmax.f32 %v2323_v58, 1e-24 }
 0x2ed   : > { %v2508_v35 = vmul.f32 %v2872_v20, %v2507_v42  ;;  %v2514_v61 = vmul.f32 %v2874_v48, %v2341_v21  ;;  %vm2520_vm6 = vweird.f32 %v2874_v48 }
 0x2ee   : > { %2875 = vrsqrt.f32 %v2342_v36  ;;  %vm2521_vm8 = vmor %vm2519_vm7, %vm2520_vm6  ;;  %vm2529_vm10 = vweird.f32 %v2342_v36 }
 0x2ef   : > { %v2512_v59 = vsel %vm2511_vm5, %v2872_v20, %v2508_v35  ;;  %v2515_v39 = vmul.f32 %v2874_v48, %v2514_v61 }
 0x2f0   : > { %v2549_v8 = vmul.f32 %v2512_v59, %v3619_v9 }
 0x2f1   : > { %v2516_v10 = vmul.f32 0.5, %v2515_v39 }
 0x2f2   : > { %2568 = vst [vmem:[%s3639_s19 + $0x80] sm:$0xff] %v2549_v8 }
 0x2f3   : > { %v2517_v40 = vsub.f32 1.5, %v2516_v10 }
 0x2f4   : > { %v2876_v34 = vpop.eup %2875 }
 0x2f5   : > { %v2518_v13 = vmul.f32 %v2874_v48, %v2517_v40  ;;  %v2524_v29 = vmul.f32 %v2876_v34, %v2342_v36  ;;  %vm2530_vm9 = vweird.f32 %v2876_v34 }
 0x2f6   : > { %vm2531_vm11 = vmor %vm2529_vm10, %vm2530_vm9 }
 0x2f7   : > { %v2522_v46 = vsel %vm2521_vm8, %v2874_v48, %v2518_v13  ;;  %v2525_v0 = vmul.f32 %v2876_v34, %v2524_v29 }
 0x2f8   : > { %v2550_v44 = vmul.f32 %v2522_v46, %v3626_v7 }
 0x2f9   : > { %v2526_v33 = vmul.f32 0.5, %v2525_v0 }
 0x2fa   : > { %2569 = vst [vmem:[%s3639_s19 + $0x88] sm:$0xff] %v2550_v44 }
 0x2fb   : > { %v2527_v9 = vsub.f32 1.5, %v2526_v33 }
 0x2fd   : > { %v2528_v50 = vmul.f32 %v2876_v34, %v2527_v9 }
 0x2ff   : > { %v2532_v16 = vsel %vm2531_vm11, %v2876_v34, %v2528_v50 }
 0x300   : > { %v2551_v7 = vmul.f32 %v2532_v16, %v3634_v38 }
 0x302   : > { %2570 = vst [vmem:[%s3639_s19 + $0x90] sm:$0xff] %v2551_v7 }
 0x303   : > { %2964 = shalt.err (!%p2961_p0)
}
 0x304   : > { %s3030_s28 = smov 128   ;;  %s3031_s4 = smov 8  }
 0x305   : > { %2727 = dma.vmem_to_hbm [thread:$0]  (%p3122_p5), %s2585_s16, 2432, %s2587_s21, %s2572_s12, %s3030_s28, %s3030_s28, %s3031_s4  }
 0x306 PF: > { %s2601_s6 = sand.u32 1, %s3003_s9   ;;  %p2738_p3 = pnand %p2687_p11, %p3096_p6 }
 0x307   : > { %s2602_s17 = scalar_lea.sflag [#allocation4], %s2601_s6 }
 0x308   : > { %p2739_p7 = pneg %p2738_p3 }
 0x30a   : > { %2998 = dma.done.wait (%p2739_p7), %s2602_s17, 2432  }
 0x30b   : > { %3000 = vsyncadd (%p2739_p7), %s2602_s17, 4294964864  ;;  %s19_s14 = sadd.s32 1, %s3023_s14   ;;  %s3726_s9 = smov %s3007_s10 }
 0x30c   : > { %p16_p9 = scmp.ge.s32.totalorder %s19_s14, 4   ;;  %s3727_s10 = smov %s3011_s11 }
 0x30d   : > { %s3728_s11 = smov %s3131_s7  ;;  %s3729_s12 = smov %s3019_s13 }
 0x30e   : > { %s3730_s13 = smov %s3732_s29  ;;  %18 = sbr.rel (!%p16_p9) target bundleno = 7 (0x7), region = 90 }
 0x313   :  { %2608 = vsyncpa [#allocation3], 1 }
 0x314   :  { %2610 = vsyncpa [#allocation3 + $0x1], 1 }
 0x315   :  { %2611 = vsyncpa [#allocation6], 1 }
 0x316   :  { %2612 = vsyncpa [#allocation4], 1 }
 0x317   :  { %2614 = vsyncpa [#allocation4 + $0x1], 1 }

</bundles_post_ra>
